<compile_context>
chip_gen: v7x
topology: tpu7x:2x2x1
jax: 0.10.0
libtpu: 0.0.40
codegen_flags: <defaults>
</compile_context>

<pallas_src>
import functools

import jax
import jax.numpy as jnp
from jax.experimental import pallas as pl
from jax.experimental.pallas import tpu as pltpu


def _output_transition_kernel(x_ref, w1_ref, b1_ref, w2_ref, b2_ref,
                              w3_ref, b3_ref, o_ref,
                              pad1, col1, pad2, col2, pad3, col3,
                              *, H, W, td):
    """One grid step = `td` depth planes of one sample, all three convs fused.

    x_ref : (1, C0, td*H*W)  lane-dense input block
    o_ref : (1, C3, td*H*W)  lane-dense output block
    padX  : (CinX, H*W + 2*(W+1)) f32  flat zero-halo staging buffer (layer X)
    colX  : (9*CinX, H*W) f32          im2col matrix (layer X)
    """
    HW = H * W
    halo = W + 1

    # ---- hoisted per-step constants -------------------------------------
    # Column-edge validity masks.  Only the w-1 / w+1 taps can wrap across a
    # row boundary; out-of-range rows are covered by the zero halos below.
    lane = jax.lax.broadcasted_iota(jnp.int32, (1, HW), 1)
    col_id = lane % W
    valid_wm1 = col_id >= 1          # reading (h', w-1)
    valid_wp1 = col_id <= W - 2      # reading (h', w+1)

    # Zero only the two (W+1)-lane halos, once per grid step (the interior is
    # fully overwritten every layer / depth slice).
    for pad_ref in (pad1, pad2, pad3):
        cin = pad_ref.shape[0]
        zeros = jnp.zeros((cin, halo), jnp.float32)
        pad_ref[:, 0:halo] = zeros
        pad_ref[:, halo + HW:halo + HW + halo] = zeros

    # Weights / biases loaded and cast once (dense (Cout, 9*Cin) tiles).
    w1 = w1_ref[...].astype(jnp.float32)
    w2 = w2_ref[...].astype(jnp.float32)
    w3 = w3_ref[...].astype(jnp.float32)
    b1 = b1_ref[...].astype(jnp.float32)
    b2 = b2_ref[...].astype(jnp.float32)
    b3 = b3_ref[...].astype(jnp.float32)

    def conv3x3(x, w, b, pad_ref, col_ref):
        # x: (Cin, HW) f32 activation of one depth plane -> (Cout, HW) f32.
        cin = x.shape[0]
        # Stage the activation into the zero-halo flat buffer with one
        # lane-dense store; every 3x3 tap is then a contiguous lane window.
        pad_ref[:, halo:halo + HW] = x
        for kh in range(3):
            for kw in range(3):
                dh, dw = kh - 1, kw - 1
                t = kh * 3 + kw
                start = halo + dh * W + dw
                win = pad_ref[:, start:start + HW]          # (Cin, HW)
                if dw == -1:
                    win = jnp.where(valid_wm1, win, 0.0)
                elif dw == 1:
                    win = jnp.where(valid_wp1, win, 0.0)
                col_ref[t * cin:(t + 1) * cin, :] = win     # im2col row block
        # Single MXU contraction over all 9 taps * Cin channels.
        return jnp.dot(w, col_ref[...],
                       preferred_element_type=jnp.float32) + b

    for t in range(td):                       # small static unrolled loop
        sl = slice(t * HW, (t + 1) * HW)      # lane offset: multiple of 128
        x = x_ref[0, :, sl].astype(jnp.float32)        # (C0, HW)
        a = conv3x3(x, w1, b1, pad1, col1)             # (C1, HW)
        a = conv3x3(a, w2, b2, pad2, col2)             # (C2, HW)
        a = conv3x3(a, w3, b3, pad3, col3)             # (C3, HW)
        o_ref[0, :, sl] = a.astype(o_ref.dtype)


def _pick_depth_tile(D, H, W, chans, budget_bytes=3 << 20):
    """Largest divisor of D whose per-step f32 working set fits `budget_bytes`,
    preferring >=2 depth blocks so the grid pipelines and both v7x TensorCores
    get work.  Sized against the smallest default scoped-VMEM budget so the
    same tiling is safe on v5e/v6e (128 MiB) and v7x (64 MiB)."""
    HW = H * W
    if HW % 128 != 0:
        # Keep the last-dim block equal to the full extent (always layout
        # legal); the grid then tiles over batch only.
        return D
    c0, c1, c2, c3 = chans
    # activations + flat halo buffers + im2col scratch + double-buffered blocks
    per_plane = 4 * HW * (12 * (c0 + c1 + c2) + 2 * c3)
    td = 1
    for cand in range(1, D + 1):
        if D % cand:
            continue
        if cand * per_plane > budget_bytes:
            continue
        if D // cand >= 2 or D == 1:
            td = cand
    return td


def output_transition(x_ncdhw, params, td=None):
    """Forward pass matching OutputTransition.forward (NCDHW in, NCDHW out)."""
    N, C, D, H, W = x_ncdhw.shape
    (w1, b1), (w2, b2), (w3, b3) = params        # w: (3,3,Cout,Cin), b: (Cout,)
    C1, C2, C3 = w1.shape[2], w2.shape[2], w3.shape[2]
    assert w1.shape[3] == C and w2.shape[3] == C1 and w3.shape[3] == C2
    HW = H * W
    L = HW + 2 * (W + 1)                         # flat staging-buffer length

    if td is None:
        td = _pick_depth_tile(D, H, W, (C, C1, C2, C3))
    assert D % td == 0, (D, td)

    # Pre-pack each (3,3,Cout,Cin) weight into a dense (Cout, 9*Cin) tile,
    # tap-major / channel-minor (column t*Cin + ci with t = kh*3 + kw), which
    # matches the im2col row order built inside the kernel.
    def pack(w):
        cout, cin = w.shape[2], w.shape[3]
        return jnp.transpose(w, (2, 0, 1, 3)).reshape(cout, 9 * cin)

    # Lane-dense view: NCDHW -> (N, C, D*H*W) is a free contiguous reshape.
    x_flat = x_ncdhw.reshape(N, C, D * HW)

    kernel = pl.pallas_call(
        functools.partial(_output_transition_kernel, H=H, W=W, td=td),
        out_shape=jax.ShapeDtypeStruct((N, C3, D * HW), x_ncdhw.dtype),
        grid_spec=pltpu.PrefetchScalarGridSpec(
            num_scalar_prefetch=0,
            grid=(N, D // td),                   # independent (batch, depth)
            in_specs=[
                pl.BlockSpec((1, C, td * HW), lambda n, d: (n, 0, d)),
                pl.BlockSpec((C1, 9 * C), lambda n, d: (0, 0)),
                pl.BlockSpec((C1, 1), lambda n, d: (0, 0)),
                pl.BlockSpec((C2, 9 * C1), lambda n, d: (0, 0)),
                pl.BlockSpec((C2, 1), lambda n, d: (0, 0)),
                pl.BlockSpec((C3, 9 * C2), lambda n, d: (0, 0)),
                pl.BlockSpec((C3, 1), lambda n, d: (0, 0)),
            ],
            out_specs=pl.BlockSpec((1, C3, td * HW), lambda n, d: (n, 0, d)),
            scratch_shapes=[
                pltpu.VMEM((C, L), jnp.float32),        # pad1 (layer-1 input)
                pltpu.VMEM((9 * C, HW), jnp.float32),   # col1
                pltpu.VMEM((C1, L), jnp.float32),       # pad2
                pltpu.VMEM((9 * C1, HW), jnp.float32),  # col2
                pltpu.VMEM((C2, L), jnp.float32),       # pad3
                pltpu.VMEM((9 * C2, HW), jnp.float32),  # col3
            ],
        ),
        compiler_params=pltpu.CompilerParams(
            dimension_semantics=("parallel", "parallel")),
    )
    out_flat = kernel(x_flat,
                      pack(w1), b1.reshape(C1, 1),
                      pack(w2), b2.reshape(C2, 1),
                      pack(w3), b3.reshape(C3, 1))
    return out_flat.reshape(N, C3, D, H, W)


def init_params(key, in_chans, out_chans=1, dtype=jnp.float32):
    """Deterministic synthetic parameters (shapes match the nn.Conv3d layers).

    Weights are stored as (3, 3, Cout, Cin) -- equivalent to PyTorch's
    (Cout, Cin, 1, 3, 3) with the depth-1 kernel dim dropped.
    """
    ch = in_chans
    shapes = [
        (ch, ch // 2),          # conv1: inChans -> inChans//2
        (ch // 2, ch // 2),     # conv2
        (ch // 2, out_chans),   # conv3 -> outChans
    ]
    params = []
    for (cin, cout) in shapes:
        key, kw_, kb_ = jax.random.split(key, 3)
        fan_in = cin * 3 * 3
        bound = 1.0 / (fan_in ** 0.5)
        w = jax.random.uniform(kw_, (3, 3, cout, cin), dtype, -bound, bound)
        b = jax.random.uniform(kb_, (cout,), dtype, -bound, bound)
        params.append((w, b))
    return params


def _reference(x_ncdhw, params):
    """Pure-JAX reference using lax.conv (for verification)."""
    N, C, D, H, W = x_ncdhw.shape
    x = jnp.transpose(x_ncdhw, (0, 2, 1, 3, 4)).reshape(N * D, C, H, W)
    for (w, b) in params:
        w_oihw = jnp.transpose(w, (2, 3, 0, 1))        # (Cout, Cin, 3, 3)
        x = jax.lax.conv_general_dilated(
            x, w_oihw, window_strides=(1, 1), padding="SAME",
            dimension_numbers=("NCHW", "OIHW", "NCHW"),
        ) + b.reshape(1, -1, 1, 1)
    Cout = x.shape[1]
    x = x.reshape(N, D, Cout, H, W)
    return jnp.transpose(x, (0, 2, 1, 3, 4))


if __name__ == "__main__":
    key = jax.random.PRNGKey(0)
    N, inChans, D, H, W = 2, 4, 4, 16, 16
    outChans = 1

    kx, kp = jax.random.split(key)
    x = jax.random.normal(kx, (N, inChans, D, H, W), jnp.float32)
    params = init_params(kp, inChans, outChans)

    out = jax.block_until_ready(output_transition(x, params))
    assert out.shape == (N, outChans, D, H, W), out.shape

    ref = jax.block_until_ready(_reference(x, params))
    assert jnp.allclose(out, ref, atol=1e-4, rtol=1e-4)

    print("KERNEL_OK")
</pallas_src>

<mosaic_0001>
module attributes {stable_mosaic.version = 11 : i64} {
  func.func @_output_transition_kernel(%arg0: i32, %arg1: i32, %arg2: memref<1x4x512xf32, #tpu.memory_space<vmem>>, %arg3: memref<2x36xf32, #tpu.memory_space<vmem>>, %arg4: memref<2x1xf32, #tpu.memory_space<vmem>>, %arg5: memref<2x18xf32, #tpu.memory_space<vmem>>, %arg6: memref<2x1xf32, #tpu.memory_space<vmem>>, %arg7: memref<1x18xf32, #tpu.memory_space<vmem>>, %arg8: memref<1x1xf32, #tpu.memory_space<vmem>>, %arg9: memref<1x1x512xf32, #tpu.memory_space<vmem>>, %arg10: memref<4x290xf32, #tpu.memory_space<vmem>>, %arg11: memref<36x256xf32, #tpu.memory_space<vmem>>, %arg12: memref<2x290xf32, #tpu.memory_space<vmem>>, %arg13: memref<18x256xf32, #tpu.memory_space<vmem>>, %arg14: memref<2x290xf32, #tpu.memory_space<vmem>>, %arg15: memref<18x256xf32, #tpu.memory_space<vmem>>) attributes {dimension_semantics = [#tpu.dimension_semantics<parallel>, #tpu.dimension_semantics<parallel>], iteration_bounds = array<i64: 2, 2>, scalar_prefetch = 0 : i64, scratch_operands = 6 : i64, tpu.core_type = #tpu.core_type<tc>, window_params = [{transform_indices = @transform_0, window_bounds = array<i64: 1, 4, 512>}, {pipeline_mode = #tpu.pipeline_mode<synchronous>, transform_indices = @transform_1, window_bounds = array<i64: 2, 36>}, {pipeline_mode = #tpu.pipeline_mode<synchronous>, transform_indices = @transform_2, window_bounds = array<i64: 2, 1>}, {pipeline_mode = #tpu.pipeline_mode<synchronous>, transform_indices = @transform_3, window_bounds = array<i64: 2, 18>}, {pipeline_mode = #tpu.pipeline_mode<synchronous>, transform_indices = @transform_4, window_bounds = array<i64: 2, 1>}, {pipeline_mode = #tpu.pipeline_mode<synchronous>, transform_indices = @transform_5, window_bounds = array<i64: 1, 18>}, {pipeline_mode = #tpu.pipeline_mode<synchronous>, transform_indices = @transform_6, window_bounds = array<i64: 1, 1>}, {transform_indices = @transform_7, window_bounds = array<i64: 1, 1, 512>}]} {
    %0 = tpu.iota {dimensions = array<i32: 1>} : vector<1x256xi32>
    %c16_i32 = arith.constant 16 : i32
    %c0_i32 = arith.constant 0 : i32
    %1 = arith.cmpi eq, %c16_i32, %c0_i32 : i32
    %c1_i32 = arith.constant 1 : i32
    %2 = arith.select %1, %c1_i32, %c16_i32 : i32
    %3 = vector.broadcast %2 : i32 to vector<1x256xi32>
    %4 = arith.remsi %0, %3 : vector<1x256xi32>
    %c0_i32_0 = arith.constant 0 : i32
    %5 = vector.broadcast %c0_i32_0 : i32 to vector<1x256xi32>
    %6 = arith.cmpi ne, %4, %5 : vector<1x256xi32>
    %c0_i32_1 = arith.constant 0 : i32
    %7 = vector.broadcast %c0_i32_1 : i32 to vector<1x256xi32>
    %8 = arith.cmpi slt, %4, %7 : vector<1x256xi32>
    %c0_i32_2 = arith.constant 0 : i32
    %9 = arith.cmpi slt, %2, %c0_i32_2 : i32
    %10 = vector.broadcast %9 : i1 to vector<1x256xi1>
    %11 = vector.broadcast %10 : vector<1x256xi1> to vector<1x256xi1>
    %12 = arith.xori %8, %11 : vector<1x256xi1>
    %13 = arith.andi %12, %6 : vector<1x256xi1>
    %14 = vector.broadcast %2 : i32 to vector<1x256xi32>
    %15 = arith.addi %4, %14 : vector<1x256xi32>
    %16 = arith.select %13, %15, %4 : vector<1x256xi1>, vector<1x256xi32>
    %c1_i32_3 = arith.constant 1 : i32
    %17 = vector.broadcast %c1_i32_3 : i32 to vector<1x256xi32>
    %18 = arith.cmpi sge, %16, %17 : vector<1x256xi32>
    %c14_i32 = arith.constant 14 : i32
    %19 = vector.broadcast %c14_i32 : i32 to vector<1x256xi32>
    %20 = arith.cmpi sle, %16, %19 : vector<1x256xi32>
    %cst = arith.constant 0.000000e+00 : f32
    %21 = vector.broadcast %cst : f32 to vector<4x17xf32>
    %c0 = arith.constant 0 : index
    %c0_4 = arith.constant 0 : index
    %22 = vector.load %arg10[%c0, %c0_4] : memref<4x290xf32, #tpu.memory_space<vmem>>, vector<4x17xf32>
    tpu.vector_store %arg10[%c0, %c0_4], %21 {strides = array<i32>} : memref<4x290xf32, #tpu.memory_space<vmem>>, vector<4x17xf32>,
    %c0_5 = arith.constant 0 : index
    %c273 = arith.constant 273 : index
    %23 = vector.load %arg10[%c0_5, %c273] : memref<4x290xf32, #tpu.memory_space<vmem>>, vector<4x17xf32>
    tpu.vector_store %arg10[%c0_5, %c273], %21 {strides = array<i32>} : memref<4x290xf32, #tpu.memory_space<vmem>>, vector<4x17xf32>,
    %cst_6 = arith.constant 0.000000e+00 : f32
    %24 = vector.broadcast %cst_6 : f32 to vector<2x17xf32>
    %c0_7 = arith.constant 0 : index
    %c0_8 = arith.constant 0 : index
    %25 = vector.load %arg12[%c0_7, %c0_8] : memref<2x290xf32, #tpu.memory_space<vmem>>, vector<2x17xf32>
    tpu.vector_store %arg12[%c0_7, %c0_8], %24 {strides = array<i32>} : memref<2x290xf32, #tpu.memory_space<vmem>>, vector<2x17xf32>,
    %c0_9 = arith.constant 0 : index
    %c273_10 = arith.constant 273 : index
    %26 = vector.load %arg12[%c0_9, %c273_10] : memref<2x290xf32, #tpu.memory_space<vmem>>, vector<2x17xf32>
    tpu.vector_store %arg12[%c0_9, %c273_10], %24 {strides = array<i32>} : memref<2x290xf32, #tpu.memory_space<vmem>>, vector<2x17xf32>,
    %cst_11 = arith.constant 0.000000e+00 : f32
    %27 = vector.broadcast %cst_11 : f32 to vector<2x17xf32>
    %c0_12 = arith.constant 0 : index
    %c0_13 = arith.constant 0 : index
    %28 = vector.load %arg14[%c0_12, %c0_13] : memref<2x290xf32, #tpu.memory_space<vmem>>, vector<2x17xf32>
    tpu.vector_store %arg14[%c0_12, %c0_13], %27 {strides = array<i32>} : memref<2x290xf32, #tpu.memory_space<vmem>>, vector<2x17xf32>,
    %c0_14 = arith.constant 0 : index
    %c273_15 = arith.constant 273 : index
    %29 = vector.load %arg14[%c0_14, %c273_15] : memref<2x290xf32, #tpu.memory_space<vmem>>, vector<2x17xf32>
    tpu.vector_store %arg14[%c0_14, %c273_15], %27 {strides = array<i32>} : memref<2x290xf32, #tpu.memory_space<vmem>>, vector<2x17xf32>,
    %c0_16 = arith.constant 0 : index
    %c0_17 = arith.constant 0 : index
    %30 = vector.load %arg3[%c0_16, %c0_17] : memref<2x36xf32, #tpu.memory_space<vmem>>, vector<2x36xf32>
    %c0_18 = arith.constant 0 : index
    %c0_19 = arith.constant 0 : index
    %31 = vector.load %arg5[%c0_18, %c0_19] : memref<2x18xf32, #tpu.memory_space<vmem>>, vector<2x18xf32>
    %c0_20 = arith.constant 0 : index
    %c0_21 = arith.constant 0 : index
    %32 = vector.load %arg7[%c0_20, %c0_21] : memref<1x18xf32, #tpu.memory_space<vmem>>, vector<1x18xf32>
    %c0_22 = arith.constant 0 : index
    %c0_23 = arith.constant 0 : index
    %33 = vector.load %arg4[%c0_22, %c0_23] : memref<2x1xf32, #tpu.memory_space<vmem>>, vector<2x1xf32>
    %c0_24 = arith.constant 0 : index
    %c0_25 = arith.constant 0 : index
    %34 = vector.load %arg6[%c0_24, %c0_25] : memref<2x1xf32, #tpu.memory_space<vmem>>, vector<2x1xf32>
    %c0_26 = arith.constant 0 : index
    %c0_27 = arith.constant 0 : index
    %35 = vector.load %arg8[%c0_26, %c0_27] : memref<1x1xf32, #tpu.memory_space<vmem>>, vector<1x1xf32>
    %c0_28 = arith.constant 0 : index
    %c0_29 = arith.constant 0 : index
    %c0_30 = arith.constant 0 : index
    %36 = vector.load %arg2[%c0_28, %c0_29, %c0_30] : memref<1x4x512xf32, #tpu.memory_space<vmem>>, vector<1x4x256xf32>
    %37 = vector.shape_cast %36 : vector<1x4x256xf32> to vector<4x256xf32>
    %c0_31 = arith.constant 0 : index
    %c17 = arith.constant 17 : index
    %38 = vector.load %arg10[%c0_31, %c17] : memref<4x290xf32, #tpu.memory_space<vmem>>, vector<4x256xf32>
    tpu.vector_store %arg10[%c0_31, %c17], %37 {strides = array<i32>} : memref<4x290xf32, #tpu.memory_space<vmem>>, vector<4x256xf32>,
    %c0_32 = arith.constant 0 : index
    %c0_33 = arith.constant 0 : index
    %39 = vector.load %arg10[%c0_32, %c0_33] : memref<4x290xf32, #tpu.memory_space<vmem>>, vector<4x256xf32>
    %cst_34 = arith.constant 0.000000e+00 : f32
    %40 = vector.shape_cast %18 : vector<1x256xi1> to vector<1x256xi1>
    %41 = vector.broadcast %40 : vector<1x256xi1> to vector<4x256xi1>
    %42 = vector.broadcast %cst_34 : f32 to vector<4x256xf32>
    %43 = arith.select %41, %39, %42 : vector<4x256xi1>, vector<4x256xf32>
    %c0_35 = arith.constant 0 : index
    %c0_36 = arith.constant 0 : index
    %44 = vector.load %arg11[%c0_35, %c0_36] : memref<36x256xf32, #tpu.memory_space<vmem>>, vector<4x256xf32>
    tpu.vector_store %arg11[%c0_35, %c0_36], %43 {strides = array<i32>} : memref<36x256xf32, #tpu.memory_space<vmem>>, vector<4x256xf32>,
    %c0_37 = arith.constant 0 : index
    %c1 = arith.constant 1 : index
    %45 = vector.load %arg10[%c0_37, %c1] : memref<4x290xf32, #tpu.memory_space<vmem>>, vector<4x256xf32>
    %c4 = arith.constant 4 : index
    %c0_38 = arith.constant 0 : index
    %46 = vector.load %arg11[%c4, %c0_38] : memref<36x256xf32, #tpu.memory_space<vmem>>, vector<4x256xf32>
    tpu.vector_store %arg11[%c4, %c0_38], %45 {strides = array<i32>} : memref<36x256xf32, #tpu.memory_space<vmem>>, vector<4x256xf32>,
    %c0_39 = arith.constant 0 : index
    %c2 = arith.constant 2 : index
    %47 = vector.load %arg10[%c0_39, %c2] : memref<4x290xf32, #tpu.memory_space<vmem>>, vector<4x256xf32>
    %cst_40 = arith.constant 0.000000e+00 : f32
    %48 = vector.shape_cast %20 : vector<1x256xi1> to vector<1x256xi1>
    %49 = vector.broadcast %48 : vector<1x256xi1> to vector<4x256xi1>
    %50 = vector.broadcast %cst_40 : f32 to vector<4x256xf32>
    %51 = arith.select %49, %47, %50 : vector<4x256xi1>, vector<4x256xf32>
    %c8 = arith.constant 8 : index
    %c0_41 = arith.constant 0 : index
    %52 = vector.load %arg11[%c8, %c0_41] : memref<36x256xf32, #tpu.memory_space<vmem>>, vector<4x256xf32>
    tpu.vector_store %arg11[%c8, %c0_41], %51 {strides = array<i32>} : memref<36x256xf32, #tpu.memory_space<vmem>>, vector<4x256xf32>,
    %c0_42 = arith.constant 0 : index
    %c16 = arith.constant 16 : index
    %53 = vector.load %arg10[%c0_42, %c16] : memref<4x290xf32, #tpu.memory_space<vmem>>, vector<4x256xf32>
    %cst_43 = arith.constant 0.000000e+00 : f32
    %54 = vector.shape_cast %18 : vector<1x256xi1> to vector<1x256xi1>
    %55 = vector.broadcast %54 : vector<1x256xi1> to vector<4x256xi1>
    %56 = vector.broadcast %cst_43 : f32 to vector<4x256xf32>
    %57 = arith.select %55, %53, %56 : vector<4x256xi1>, vector<4x256xf32>
    %c12 = arith.constant 12 : index
    %c0_44 = arith.constant 0 : index
    %58 = vector.load %arg11[%c12, %c0_44] : memref<36x256xf32, #tpu.memory_space<vmem>>, vector<4x256xf32>
    tpu.vector_store %arg11[%c12, %c0_44], %57 {strides = array<i32>} : memref<36x256xf32, #tpu.memory_space<vmem>>, vector<4x256xf32>,
    %c0_45 = arith.constant 0 : index
    %c17_46 = arith.constant 17 : index
    %59 = vector.load %arg10[%c0_45, %c17_46] : memref<4x290xf32, #tpu.memory_space<vmem>>, vector<4x256xf32>
    %c16_47 = arith.constant 16 : index
    %c0_48 = arith.constant 0 : index
    %60 = vector.load %arg11[%c16_47, %c0_48] : memref<36x256xf32, #tpu.memory_space<vmem>>, vector<4x256xf32>
    tpu.vector_store %arg11[%c16_47, %c0_48], %59 {strides = array<i32>} : memref<36x256xf32, #tpu.memory_space<vmem>>, vector<4x256xf32>,
    %c0_49 = arith.constant 0 : index
    %c18 = arith.constant 18 : index
    %61 = vector.load %arg10[%c0_49, %c18] : memref<4x290xf32, #tpu.memory_space<vmem>>, vector<4x256xf32>
    %cst_50 = arith.constant 0.000000e+00 : f32
    %62 = vector.shape_cast %20 : vector<1x256xi1> to vector<1x256xi1>
    %63 = vector.broadcast %62 : vector<1x256xi1> to vector<4x256xi1>
    %64 = vector.broadcast %cst_50 : f32 to vector<4x256xf32>
    %65 = arith.select %63, %61, %64 : vector<4x256xi1>, vector<4x256xf32>
    %c20 = arith.constant 20 : index
    %c0_51 = arith.constant 0 : index
    %66 = vector.load %arg11[%c20, %c0_51] : memref<36x256xf32, #tpu.memory_space<vmem>>, vector<4x256xf32>
    tpu.vector_store %arg11[%c20, %c0_51], %65 {strides = array<i32>} : memref<36x256xf32, #tpu.memory_space<vmem>>, vector<4x256xf32>,
    %c0_52 = arith.constant 0 : index
    %c32 = arith.constant 32 : index
    %67 = vector.load %arg10[%c0_52, %c32] : memref<4x290xf32, #tpu.memory_space<vmem>>, vector<4x256xf32>
    %cst_53 = arith.constant 0.000000e+00 : f32
    %68 = vector.shape_cast %18 : vector<1x256xi1> to vector<1x256xi1>
    %69 = vector.broadcast %68 : vector<1x256xi1> to vector<4x256xi1>
    %70 = vector.broadcast %cst_53 : f32 to vector<4x256xf32>
    %71 = arith.select %69, %67, %70 : vector<4x256xi1>, vector<4x256xf32>
    %c24 = arith.constant 24 : index
    %c0_54 = arith.constant 0 : index
    %72 = vector.load %arg11[%c24, %c0_54] : memref<36x256xf32, #tpu.memory_space<vmem>>, vector<4x256xf32>
    tpu.vector_store %arg11[%c24, %c0_54], %71 {strides = array<i32>} : memref<36x256xf32, #tpu.memory_space<vmem>>, vector<4x256xf32>,
    %c0_55 = arith.constant 0 : index
    %c33 = arith.constant 33 : index
    %73 = vector.load %arg10[%c0_55, %c33] : memref<4x290xf32, #tpu.memory_space<vmem>>, vector<4x256xf32>
    %c28 = arith.constant 28 : index
    %c0_56 = arith.constant 0 : index
    %74 = vector.load %arg11[%c28, %c0_56] : memref<36x256xf32, #tpu.memory_space<vmem>>, vector<4x256xf32>
    tpu.vector_store %arg11[%c28, %c0_56], %73 {strides = array<i32>} : memref<36x256xf32, #tpu.memory_space<vmem>>, vector<4x256xf32>,
    %c0_57 = arith.constant 0 : index
    %c34 = arith.constant 34 : index
    %75 = vector.load %arg10[%c0_57, %c34] : memref<4x290xf32, #tpu.memory_space<vmem>>, vector<4x256xf32>
    %cst_58 = arith.constant 0.000000e+00 : f32
    %76 = vector.shape_cast %20 : vector<1x256xi1> to vector<1x256xi1>
    %77 = vector.broadcast %76 : vector<1x256xi1> to vector<4x256xi1>
    %78 = vector.broadcast %cst_58 : f32 to vector<4x256xf32>
    %79 = arith.select %77, %75, %78 : vector<4x256xi1>, vector<4x256xf32>
    %c32_59 = arith.constant 32 : index
    %c0_60 = arith.constant 0 : index
    %80 = vector.load %arg11[%c32_59, %c0_60] : memref<36x256xf32, #tpu.memory_space<vmem>>, vector<4x256xf32>
    tpu.vector_store %arg11[%c32_59, %c0_60], %79 {strides = array<i32>} : memref<36x256xf32, #tpu.memory_space<vmem>>, vector<4x256xf32>,
    %c0_61 = arith.constant 0 : index
    %c0_62 = arith.constant 0 : index
    %81 = vector.load %arg11[%c0_61, %c0_62] : memref<36x256xf32, #tpu.memory_space<vmem>>, vector<36x256xf32>
    %cst_63 = arith.constant dense<0.000000e+00> : vector<2x256xf32>
    %82 = tpu.matmul %30, %81, %cst_63 {dimension_numbers = #tpu.dot_dimension_numbers<[1], [0], [0], [1], [0, 0, 1, 1], [], []>} : vector<2x36xf32>, vector<36x256xf32>, vector<2x256xf32> -> vector<2x256xf32>
    %83 = vector.broadcast %33 : vector<2x1xf32> to vector<2x256xf32>
    %84 = arith.addf %82, %83 : vector<2x256xf32>
    %c0_64 = arith.constant 0 : index
    %c17_65 = arith.constant 17 : index
    %85 = vector.load %arg12[%c0_64, %c17_65] : memref<2x290xf32, #tpu.memory_space<vmem>>, vector<2x256xf32>
    tpu.vector_store %arg12[%c0_64, %c17_65], %84 {strides = array<i32>} : memref<2x290xf32, #tpu.memory_space<vmem>>, vector<2x256xf32>,
    %c0_66 = arith.constant 0 : index
    %c0_67 = arith.constant 0 : index
    %86 = vector.load %arg12[%c0_66, %c0_67] : memref<2x290xf32, #tpu.memory_space<vmem>>, vector<2x256xf32>
    %cst_68 = arith.constant 0.000000e+00 : f32
    %87 = vector.shape_cast %18 : vector<1x256xi1> to vector<1x256xi1>
    %88 = vector.broadcast %87 : vector<1x256xi1> to vector<2x256xi1>
    %89 = vector.broadcast %cst_68 : f32 to vector<2x256xf32>
    %90 = arith.select %88, %86, %89 : vector<2x256xi1>, vector<2x256xf32>
    %c0_69 = arith.constant 0 : index
    %c0_70 = arith.constant 0 : index
    %91 = vector.load %arg13[%c0_69, %c0_70] : memref<18x256xf32, #tpu.memory_space<vmem>>, vector<2x256xf32>
    tpu.vector_store %arg13[%c0_69, %c0_70], %90 {strides = array<i32>} : memref<18x256xf32, #tpu.memory_space<vmem>>, vector<2x256xf32>,
    %c0_71 = arith.constant 0 : index
    %c1_72 = arith.constant 1 : index
    %92 = vector.load %arg12[%c0_71, %c1_72] : memref<2x290xf32, #tpu.memory_space<vmem>>, vector<2x256xf32>
    %c2_73 = arith.constant 2 : index
    %c0_74 = arith.constant 0 : index
    %93 = vector.load %arg13[%c2_73, %c0_74] : memref<18x256xf32, #tpu.memory_space<vmem>>, vector<2x256xf32>
    tpu.vector_store %arg13[%c2_73, %c0_74], %92 {strides = array<i32>} : memref<18x256xf32, #tpu.memory_space<vmem>>, vector<2x256xf32>,
    %c0_75 = arith.constant 0 : index
    %c2_76 = arith.constant 2 : index
    %94 = vector.load %arg12[%c0_75, %c2_76] : memref<2x290xf32, #tpu.memory_space<vmem>>, vector<2x256xf32>
    %cst_77 = arith.constant 0.000000e+00 : f32
    %95 = vector.shape_cast %20 : vector<1x256xi1> to vector<1x256xi1>
    %96 = vector.broadcast %95 : vector<1x256xi1> to vector<2x256xi1>
    %97 = vector.broadcast %cst_77 : f32 to vector<2x256xf32>
    %98 = arith.select %96, %94, %97 : vector<2x256xi1>, vector<2x256xf32>
    %c4_78 = arith.constant 4 : index
    %c0_79 = arith.constant 0 : index
    %99 = vector.load %arg13[%c4_78, %c0_79] : memref<18x256xf32, #tpu.memory_space<vmem>>, vector<2x256xf32>
    tpu.vector_store %arg13[%c4_78, %c0_79], %98 {strides = array<i32>} : memref<18x256xf32, #tpu.memory_space<vmem>>, vector<2x256xf32>,
    %c0_80 = arith.constant 0 : index
    %c16_81 = arith.constant 16 : index
    %100 = vector.load %arg12[%c0_80, %c16_81] : memref<2x290xf32, #tpu.memory_space<vmem>>, vector<2x256xf32>
    %cst_82 = arith.constant 0.000000e+00 : f32
    %101 = vector.shape_cast %18 : vector<1x256xi1> to vector<1x256xi1>
    %102 = vector.broadcast %101 : vector<1x256xi1> to vector<2x256xi1>
    %103 = vector.broadcast %cst_82 : f32 to vector<2x256xf32>
    %104 = arith.select %102, %100, %103 : vector<2x256xi1>, vector<2x256xf32>
    %c6 = arith.constant 6 : index
    %c0_83 = arith.constant 0 : index
    %105 = vector.load %arg13[%c6, %c0_83] : memref<18x256xf32, #tpu.memory_space<vmem>>, vector<2x256xf32>
    tpu.vector_store %arg13[%c6, %c0_83], %104 {strides = array<i32>} : memref<18x256xf32, #tpu.memory_space<vmem>>, vector<2x256xf32>,
    %c0_84 = arith.constant 0 : index
    %c17_85 = arith.constant 17 : index
    %106 = vector.load %arg12[%c0_84, %c17_85] : memref<2x290xf32, #tpu.memory_space<vmem>>, vector<2x256xf32>
    %c8_86 = arith.constant 8 : index
    %c0_87 = arith.constant 0 : index
    %107 = vector.load %arg13[%c8_86, %c0_87] : memref<18x256xf32, #tpu.memory_space<vmem>>, vector<2x256xf32>
    tpu.vector_store %arg13[%c8_86, %c0_87], %106 {strides = array<i32>} : memref<18x256xf32, #tpu.memory_space<vmem>>, vector<2x256xf32>,
    %c0_88 = arith.constant 0 : index
    %c18_89 = arith.constant 18 : index
    %108 = vector.load %arg12[%c0_88, %c18_89] : memref<2x290xf32, #tpu.memory_space<vmem>>, vector<2x256xf32>
    %cst_90 = arith.constant 0.000000e+00 : f32
    %109 = vector.shape_cast %20 : vector<1x256xi1> to vector<1x256xi1>
    %110 = vector.broadcast %109 : vector<1x256xi1> to vector<2x256xi1>
    %111 = vector.broadcast %cst_90 : f32 to vector<2x256xf32>
    %112 = arith.select %110, %108, %111 : vector<2x256xi1>, vector<2x256xf32>
    %c10 = arith.constant 10 : index
    %c0_91 = arith.constant 0 : index
    %113 = vector.load %arg13[%c10, %c0_91] : memref<18x256xf32, #tpu.memory_space<vmem>>, vector<2x256xf32>
    tpu.vector_store %arg13[%c10, %c0_91], %112 {strides = array<i32>} : memref<18x256xf32, #tpu.memory_space<vmem>>, vector<2x256xf32>,
    %c0_92 = arith.constant 0 : index
    %c32_93 = arith.constant 32 : index
    %114 = vector.load %arg12[%c0_92, %c32_93] : memref<2x290xf32, #tpu.memory_space<vmem>>, vector<2x256xf32>
    %cst_94 = arith.constant 0.000000e+00 : f32
    %115 = vector.shape_cast %18 : vector<1x256xi1> to vector<1x256xi1>
    %116 = vector.broadcast %115 : vector<1x256xi1> to vector<2x256xi1>
    %117 = vector.broadcast %cst_94 : f32 to vector<2x256xf32>
    %118 = arith.select %116, %114, %117 : vector<2x256xi1>, vector<2x256xf32>
    %c12_95 = arith.constant 12 : index
    %c0_96 = arith.constant 0 : index
    %119 = vector.load %arg13[%c12_95, %c0_96] : memref<18x256xf32, #tpu.memory_space<vmem>>, vector<2x256xf32>
    tpu.vector_store %arg13[%c12_95, %c0_96], %118 {strides = array<i32>} : memref<18x256xf32, #tpu.memory_space<vmem>>, vector<2x256xf32>,
    %c0_97 = arith.constant 0 : index
    %c33_98 = arith.constant 33 : index
    %120 = vector.load %arg12[%c0_97, %c33_98] : memref<2x290xf32, #tpu.memory_space<vmem>>, vector<2x256xf32>
    %c14 = arith.constant 14 : index
    %c0_99 = arith.constant 0 : index
    %121 = vector.load %arg13[%c14, %c0_99] : memref<18x256xf32, #tpu.memory_space<vmem>>, vector<2x256xf32>
    tpu.vector_store %arg13[%c14, %c0_99], %120 {strides = array<i32>} : memref<18x256xf32, #tpu.memory_space<vmem>>, vector<2x256xf32>,
    %c0_100 = arith.constant 0 : index
    %c34_101 = arith.constant 34 : index
    %122 = vector.load %arg12[%c0_100, %c34_101] : memref<2x290xf32, #tpu.memory_space<vmem>>, vector<2x256xf32>
    %cst_102 = arith.constant 0.000000e+00 : f32
    %123 = vector.shape_cast %20 : vector<1x256xi1> to vector<1x256xi1>
    %124 = vector.broadcast %123 : vector<1x256xi1> to vector<2x256xi1>
    %125 = vector.broadcast %cst_102 : f32 to vector<2x256xf32>
    %126 = arith.select %124, %122, %125 : vector<2x256xi1>, vector<2x256xf32>
    %c16_103 = arith.constant 16 : index
    %c0_104 = arith.constant 0 : index
    %127 = vector.load %arg13[%c16_103, %c0_104] : memref<18x256xf32, #tpu.memory_space<vmem>>, vector<2x256xf32>
    tpu.vector_store %arg13[%c16_103, %c0_104], %126 {strides = array<i32>} : memref<18x256xf32, #tpu.memory_space<vmem>>, vector<2x256xf32>,
    %c0_105 = arith.constant 0 : index
    %c0_106 = arith.constant 0 : index
    %128 = vector.load %arg13[%c0_105, %c0_106] : memref<18x256xf32, #tpu.memory_space<vmem>>, vector<18x256xf32>
    %cst_107 = arith.constant dense<0.000000e+00> : vector<2x256xf32>
    %129 = tpu.matmul %31, %128, %cst_107 {dimension_numbers = #tpu.dot_dimension_numbers<[1], [0], [0], [1], [0, 0, 1, 1], [], []>} : vector<2x18xf32>, vector<18x256xf32>, vector<2x256xf32> -> vector<2x256xf32>
    %130 = vector.broadcast %34 : vector<2x1xf32> to vector<2x256xf32>
    %131 = arith.addf %129, %130 : vector<2x256xf32>
    %c0_108 = arith.constant 0 : index
    %c17_109 = arith.constant 17 : index
    %132 = vector.load %arg14[%c0_108, %c17_109] : memref<2x290xf32, #tpu.memory_space<vmem>>, vector<2x256xf32>
    tpu.vector_store %arg14[%c0_108, %c17_109], %131 {strides = array<i32>} : memref<2x290xf32, #tpu.memory_space<vmem>>, vector<2x256xf32>,
    %c0_110 = arith.constant 0 : index
    %c0_111 = arith.constant 0 : index
    %133 = vector.load %arg14[%c0_110, %c0_111] : memref<2x290xf32, #tpu.memory_space<vmem>>, vector<2x256xf32>
    %cst_112 = arith.constant 0.000000e+00 : f32
    %134 = vector.shape_cast %18 : vector<1x256xi1> to vector<1x256xi1>
    %135 = vector.broadcast %134 : vector<1x256xi1> to vector<2x256xi1>
    %136 = vector.broadcast %cst_112 : f32 to vector<2x256xf32>
    %137 = arith.select %135, %133, %136 : vector<2x256xi1>, vector<2x256xf32>
    %c0_113 = arith.constant 0 : index
    %c0_114 = arith.constant 0 : index
    %138 = vector.load %arg15[%c0_113, %c0_114] : memref<18x256xf32, #tpu.memory_space<vmem>>, vector<2x256xf32>
    tpu.vector_store %arg15[%c0_113, %c0_114], %137 {strides = array<i32>} : memref<18x256xf32, #tpu.memory_space<vmem>>, vector<2x256xf32>,
    %c0_115 = arith.constant 0 : index
    %c1_116 = arith.constant 1 : index
    %139 = vector.load %arg14[%c0_115, %c1_116] : memref<2x290xf32, #tpu.memory_space<vmem>>, vector<2x256xf32>
    %c2_117 = arith.constant 2 : index
    %c0_118 = arith.constant 0 : index
    %140 = vector.load %arg15[%c2_117, %c0_118] : memref<18x256xf32, #tpu.memory_space<vmem>>, vector<2x256xf32>
    tpu.vector_store %arg15[%c2_117, %c0_118], %139 {strides = array<i32>} : memref<18x256xf32, #tpu.memory_space<vmem>>, vector<2x256xf32>,
    %c0_119 = arith.constant 0 : index
    %c2_120 = arith.constant 2 : index
    %141 = vector.load %arg14[%c0_119, %c2_120] : memref<2x290xf32, #tpu.memory_space<vmem>>, vector<2x256xf32>
    %cst_121 = arith.constant 0.000000e+00 : f32
    %142 = vector.shape_cast %20 : vector<1x256xi1> to vector<1x256xi1>
    %143 = vector.broadcast %142 : vector<1x256xi1> to vector<2x256xi1>
    %144 = vector.broadcast %cst_121 : f32 to vector<2x256xf32>
    %145 = arith.select %143, %141, %144 : vector<2x256xi1>, vector<2x256xf32>
    %c4_122 = arith.constant 4 : index
    %c0_123 = arith.constant 0 : index
    %146 = vector.load %arg15[%c4_122, %c0_123] : memref<18x256xf32, #tpu.memory_space<vmem>>, vector<2x256xf32>
    tpu.vector_store %arg15[%c4_122, %c0_123], %145 {strides = array<i32>} : memref<18x256xf32, #tpu.memory_space<vmem>>, vector<2x256xf32>,
    %c0_124 = arith.constant 0 : index
    %c16_125 = arith.constant 16 : index
    %147 = vector.load %arg14[%c0_124, %c16_125] : memref<2x290xf32, #tpu.memory_space<vmem>>, vector<2x256xf32>
    %cst_126 = arith.constant 0.000000e+00 : f32
    %148 = vector.shape_cast %18 : vector<1x256xi1> to vector<1x256xi1>
    %149 = vector.broadcast %148 : vector<1x256xi1> to vector<2x256xi1>
    %150 = vector.broadcast %cst_126 : f32 to vector<2x256xf32>
    %151 = arith.select %149, %147, %150 : vector<2x256xi1>, vector<2x256xf32>
    %c6_127 = arith.constant 6 : index
    %c0_128 = arith.constant 0 : index
    %152 = vector.load %arg15[%c6_127, %c0_128] : memref<18x256xf32, #tpu.memory_space<vmem>>, vector<2x256xf32>
    tpu.vector_store %arg15[%c6_127, %c0_128], %151 {strides = array<i32>} : memref<18x256xf32, #tpu.memory_space<vmem>>, vector<2x256xf32>,
    %c0_129 = arith.constant 0 : index
    %c17_130 = arith.constant 17 : index
    %153 = vector.load %arg14[%c0_129, %c17_130] : memref<2x290xf32, #tpu.memory_space<vmem>>, vector<2x256xf32>
    %c8_131 = arith.constant 8 : index
    %c0_132 = arith.constant 0 : index
    %154 = vector.load %arg15[%c8_131, %c0_132] : memref<18x256xf32, #tpu.memory_space<vmem>>, vector<2x256xf32>
    tpu.vector_store %arg15[%c8_131, %c0_132], %153 {strides = array<i32>} : memref<18x256xf32, #tpu.memory_space<vmem>>, vector<2x256xf32>,
    %c0_133 = arith.constant 0 : index
    %c18_134 = arith.constant 18 : index
    %155 = vector.load %arg14[%c0_133, %c18_134] : memref<2x290xf32, #tpu.memory_space<vmem>>, vector<2x256xf32>
    %cst_135 = arith.constant 0.000000e+00 : f32
    %156 = vector.shape_cast %20 : vector<1x256xi1> to vector<1x256xi1>
    %157 = vector.broadcast %156 : vector<1x256xi1> to vector<2x256xi1>
    %158 = vector.broadcast %cst_135 : f32 to vector<2x256xf32>
    %159 = arith.select %157, %155, %158 : vector<2x256xi1>, vector<2x256xf32>
    %c10_136 = arith.constant 10 : index
    %c0_137 = arith.constant 0 : index
    %160 = vector.load %arg15[%c10_136, %c0_137] : memref<18x256xf32, #tpu.memory_space<vmem>>, vector<2x256xf32>
    tpu.vector_store %arg15[%c10_136, %c0_137], %159 {strides = array<i32>} : memref<18x256xf32, #tpu.memory_space<vmem>>, vector<2x256xf32>,
    %c0_138 = arith.constant 0 : index
    %c32_139 = arith.constant 32 : index
    %161 = vector.load %arg14[%c0_138, %c32_139] : memref<2x290xf32, #tpu.memory_space<vmem>>, vector<2x256xf32>
    %cst_140 = arith.constant 0.000000e+00 : f32
    %162 = vector.shape_cast %18 : vector<1x256xi1> to vector<1x256xi1>
    %163 = vector.broadcast %162 : vector<1x256xi1> to vector<2x256xi1>
    %164 = vector.broadcast %cst_140 : f32 to vector<2x256xf32>
    %165 = arith.select %163, %161, %164 : vector<2x256xi1>, vector<2x256xf32>
    %c12_141 = arith.constant 12 : index
    %c0_142 = arith.constant 0 : index
    %166 = vector.load %arg15[%c12_141, %c0_142] : memref<18x256xf32, #tpu.memory_space<vmem>>, vector<2x256xf32>
    tpu.vector_store %arg15[%c12_141, %c0_142], %165 {strides = array<i32>} : memref<18x256xf32, #tpu.memory_space<vmem>>, vector<2x256xf32>,
    %c0_143 = arith.constant 0 : index
    %c33_144 = arith.constant 33 : index
    %167 = vector.load %arg14[%c0_143, %c33_144] : memref<2x290xf32, #tpu.memory_space<vmem>>, vector<2x256xf32>
    %c14_145 = arith.constant 14 : index
    %c0_146 = arith.constant 0 : index
    %168 = vector.load %arg15[%c14_145, %c0_146] : memref<18x256xf32, #tpu.memory_space<vmem>>, vector<2x256xf32>
    tpu.vector_store %arg15[%c14_145, %c0_146], %167 {strides = array<i32>} : memref<18x256xf32, #tpu.memory_space<vmem>>, vector<2x256xf32>,
    %c0_147 = arith.constant 0 : index
    %c34_148 = arith.constant 34 : index
    %169 = vector.load %arg14[%c0_147, %c34_148] : memref<2x290xf32, #tpu.memory_space<vmem>>, vector<2x256xf32>
    %cst_149 = arith.constant 0.000000e+00 : f32
    %170 = vector.shape_cast %20 : vector<1x256xi1> to vector<1x256xi1>
    %171 = vector.broadcast %170 : vector<1x256xi1> to vector<2x256xi1>
    %172 = vector.broadcast %cst_149 : f32 to vector<2x256xf32>
    %173 = arith.select %171, %169, %172 : vector<2x256xi1>, vector<2x256xf32>
    %c16_150 = arith.constant 16 : index
    %c0_151 = arith.constant 0 : index
    %174 = vector.load %arg15[%c16_150, %c0_151] : memref<18x256xf32, #tpu.memory_space<vmem>>, vector<2x256xf32>
    tpu.vector_store %arg15[%c16_150, %c0_151], %173 {strides = array<i32>} : memref<18x256xf32, #tpu.memory_space<vmem>>, vector<2x256xf32>,
    %c0_152 = arith.constant 0 : index
    %c0_153 = arith.constant 0 : index
    %175 = vector.load %arg15[%c0_152, %c0_153] : memref<18x256xf32, #tpu.memory_space<vmem>>, vector<18x256xf32>
    %cst_154 = arith.constant dense<0.000000e+00> : vector<1x256xf32>
    %176 = tpu.matmul %32, %175, %cst_154 {dimension_numbers = #tpu.dot_dimension_numbers<[1], [0], [0], [1], [0, 0, 1, 1], [], []>} : vector<1x18xf32>, vector<18x256xf32>, vector<1x256xf32> -> vector<1x256xf32>
    %177 = vector.broadcast %35 : vector<1x1xf32> to vector<1x256xf32>
    %178 = arith.addf %176, %177 : vector<1x256xf32>
    %c0_155 = arith.constant 0 : index
    %c0_156 = arith.constant 0 : index
    %c0_157 = arith.constant 0 : index
    %179 = vector.load %arg9[%c0_155, %c0_156, %c0_157] : memref<1x1x512xf32, #tpu.memory_space<vmem>>, vector<1x1x256xf32>
    %180 = vector.shape_cast %179 : vector<1x1x256xf32> to vector<1x256xf32>
    %181 = vector.shape_cast %178 : vector<1x256xf32> to vector<1x1x256xf32>
    tpu.vector_store %arg9[%c0_155, %c0_156, %c0_157], %181 {strides = array<i32>} : memref<1x1x512xf32, #tpu.memory_space<vmem>>, vector<1x1x256xf32>,
    %c0_158 = arith.constant 0 : index
    %c0_159 = arith.constant 0 : index
    %c256 = arith.constant 256 : index
    %182 = vector.load %arg2[%c0_158, %c0_159, %c256] : memref<1x4x512xf32, #tpu.memory_space<vmem>>, vector<1x4x256xf32>
    %183 = vector.shape_cast %182 : vector<1x4x256xf32> to vector<4x256xf32>
    %c0_160 = arith.constant 0 : index
    %c17_161 = arith.constant 17 : index
    %184 = vector.load %arg10[%c0_160, %c17_161] : memref<4x290xf32, #tpu.memory_space<vmem>>, vector<4x256xf32>
    tpu.vector_store %arg10[%c0_160, %c17_161], %183 {strides = array<i32>} : memref<4x290xf32, #tpu.memory_space<vmem>>, vector<4x256xf32>,
    %c0_162 = arith.constant 0 : index
    %c0_163 = arith.constant 0 : index
    %185 = vector.load %arg10[%c0_162, %c0_163] : memref<4x290xf32, #tpu.memory_space<vmem>>, vector<4x256xf32>
    %cst_164 = arith.constant 0.000000e+00 : f32
    %186 = vector.shape_cast %18 : vector<1x256xi1> to vector<1x256xi1>
    %187 = vector.broadcast %186 : vector<1x256xi1> to vector<4x256xi1>
    %188 = vector.broadcast %cst_164 : f32 to vector<4x256xf32>
    %189 = arith.select %187, %185, %188 : vector<4x256xi1>, vector<4x256xf32>
    %c0_165 = arith.constant 0 : index
    %c0_166 = arith.constant 0 : index
    %190 = vector.load %arg11[%c0_165, %c0_166] : memref<36x256xf32, #tpu.memory_space<vmem>>, vector<4x256xf32>
    tpu.vector_store %arg11[%c0_165, %c0_166], %189 {strides = array<i32>} : memref<36x256xf32, #tpu.memory_space<vmem>>, vector<4x256xf32>,
    %c0_167 = arith.constant 0 : index
    %c1_168 = arith.constant 1 : index
    %191 = vector.load %arg10[%c0_167, %c1_168] : memref<4x290xf32, #tpu.memory_space<vmem>>, vector<4x256xf32>
    %c4_169 = arith.constant 4 : index
    %c0_170 = arith.constant 0 : index
    %192 = vector.load %arg11[%c4_169, %c0_170] : memref<36x256xf32, #tpu.memory_space<vmem>>, vector<4x256xf32>
    tpu.vector_store %arg11[%c4_169, %c0_170], %191 {strides = array<i32>} : memref<36x256xf32, #tpu.memory_space<vmem>>, vector<4x256xf32>,
    %c0_171 = arith.constant 0 : index
    %c2_172 = arith.constant 2 : index
    %193 = vector.load %arg10[%c0_171, %c2_172] : memref<4x290xf32, #tpu.memory_space<vmem>>, vector<4x256xf32>
    %cst_173 = arith.constant 0.000000e+00 : f32
    %194 = vector.shape_cast %20 : vector<1x256xi1> to vector<1x256xi1>
    %195 = vector.broadcast %194 : vector<1x256xi1> to vector<4x256xi1>
    %196 = vector.broadcast %cst_173 : f32 to vector<4x256xf32>
    %197 = arith.select %195, %193, %196 : vector<4x256xi1>, vector<4x256xf32>
    %c8_174 = arith.constant 8 : index
    %c0_175 = arith.constant 0 : index
    %198 = vector.load %arg11[%c8_174, %c0_175] : memref<36x256xf32, #tpu.memory_space<vmem>>, vector<4x256xf32>
    tpu.vector_store %arg11[%c8_174, %c0_175], %197 {strides = array<i32>} : memref<36x256xf32, #tpu.memory_space<vmem>>, vector<4x256xf32>,
    %c0_176 = arith.constant 0 : index
    %c16_177 = arith.constant 16 : index
    %199 = vector.load %arg10[%c0_176, %c16_177] : memref<4x290xf32, #tpu.memory_space<vmem>>, vector<4x256xf32>
    %cst_178 = arith.constant 0.000000e+00 : f32
    %200 = vector.shape_cast %18 : vector<1x256xi1> to vector<1x256xi1>
    %201 = vector.broadcast %200 : vector<1x256xi1> to vector<4x256xi1>
    %202 = vector.broadcast %cst_178 : f32 to vector<4x256xf32>
    %203 = arith.select %201, %199, %202 : vector<4x256xi1>, vector<4x256xf32>
    %c12_179 = arith.constant 12 : index
    %c0_180 = arith.constant 0 : index
    %204 = vector.load %arg11[%c12_179, %c0_180] : memref<36x256xf32, #tpu.memory_space<vmem>>, vector<4x256xf32>
    tpu.vector_store %arg11[%c12_179, %c0_180], %203 {strides = array<i32>} : memref<36x256xf32, #tpu.memory_space<vmem>>, vector<4x256xf32>,
    %c0_181 = arith.constant 0 : index
    %c17_182 = arith.constant 17 : index
    %205 = vector.load %arg10[%c0_181, %c17_182] : memref<4x290xf32, #tpu.memory_space<vmem>>, vector<4x256xf32>
    %c16_183 = arith.constant 16 : index
    %c0_184 = arith.constant 0 : index
    %206 = vector.load %arg11[%c16_183, %c0_184] : memref<36x256xf32, #tpu.memory_space<vmem>>, vector<4x256xf32>
    tpu.vector_store %arg11[%c16_183, %c0_184], %205 {strides = array<i32>} : memref<36x256xf32, #tpu.memory_space<vmem>>, vector<4x256xf32>,
    %c0_185 = arith.constant 0 : index
    %c18_186 = arith.constant 18 : index
    %207 = vector.load %arg10[%c0_185, %c18_186] : memref<4x290xf32, #tpu.memory_space<vmem>>, vector<4x256xf32>
    %cst_187 = arith.constant 0.000000e+00 : f32
    %208 = vector.shape_cast %20 : vector<1x256xi1> to vector<1x256xi1>
    %209 = vector.broadcast %208 : vector<1x256xi1> to vector<4x256xi1>
    %210 = vector.broadcast %cst_187 : f32 to vector<4x256xf32>
    %211 = arith.select %209, %207, %210 : vector<4x256xi1>, vector<4x256xf32>
    %c20_188 = arith.constant 20 : index
    %c0_189 = arith.constant 0 : index
    %212 = vector.load %arg11[%c20_188, %c0_189] : memref<36x256xf32, #tpu.memory_space<vmem>>, vector<4x256xf32>
    tpu.vector_store %arg11[%c20_188, %c0_189], %211 {strides = array<i32>} : memref<36x256xf32, #tpu.memory_space<vmem>>, vector<4x256xf32>,
    %c0_190 = arith.constant 0 : index
    %c32_191 = arith.constant 32 : index
    %213 = vector.load %arg10[%c0_190, %c32_191] : memref<4x290xf32, #tpu.memory_space<vmem>>, vector<4x256xf32>
    %cst_192 = arith.constant 0.000000e+00 : f32
    %214 = vector.shape_cast %18 : vector<1x256xi1> to vector<1x256xi1>
    %215 = vector.broadcast %214 : vector<1x256xi1> to vector<4x256xi1>
    %216 = vector.broadcast %cst_192 : f32 to vector<4x256xf32>
    %217 = arith.select %215, %213, %216 : vector<4x256xi1>, vector<4x256xf32>
    %c24_193 = arith.constant 24 : index
    %c0_194 = arith.constant 0 : index
    %218 = vector.load %arg11[%c24_193, %c0_194] : memref<36x256xf32, #tpu.memory_space<vmem>>, vector<4x256xf32>
    tpu.vector_store %arg11[%c24_193, %c0_194], %217 {strides = array<i32>} : memref<36x256xf32, #tpu.memory_space<vmem>>, vector<4x256xf32>,
    %c0_195 = arith.constant 0 : index
    %c33_196 = arith.constant 33 : index
    %219 = vector.load %arg10[%c0_195, %c33_196] : memref<4x290xf32, #tpu.memory_space<vmem>>, vector<4x256xf32>
    %c28_197 = arith.constant 28 : index
    %c0_198 = arith.constant 0 : index
    %220 = vector.load %arg11[%c28_197, %c0_198] : memref<36x256xf32, #tpu.memory_space<vmem>>, vector<4x256xf32>
    tpu.vector_store %arg11[%c28_197, %c0_198], %219 {strides = array<i32>} : memref<36x256xf32, #tpu.memory_space<vmem>>, vector<4x256xf32>,
    %c0_199 = arith.constant 0 : index
    %c34_200 = arith.constant 34 : index
    %221 = vector.load %arg10[%c0_199, %c34_200] : memref<4x290xf32, #tpu.memory_space<vmem>>, vector<4x256xf32>
    %cst_201 = arith.constant 0.000000e+00 : f32
    %222 = vector.shape_cast %20 : vector<1x256xi1> to vector<1x256xi1>
    %223 = vector.broadcast %222 : vector<1x256xi1> to vector<4x256xi1>
    %224 = vector.broadcast %cst_201 : f32 to vector<4x256xf32>
    %225 = arith.select %223, %221, %224 : vector<4x256xi1>, vector<4x256xf32>
    %c32_202 = arith.constant 32 : index
    %c0_203 = arith.constant 0 : index
    %226 = vector.load %arg11[%c32_202, %c0_203] : memref<36x256xf32, #tpu.memory_space<vmem>>, vector<4x256xf32>
    tpu.vector_store %arg11[%c32_202, %c0_203], %225 {strides = array<i32>} : memref<36x256xf32, #tpu.memory_space<vmem>>, vector<4x256xf32>,
    %c0_204 = arith.constant 0 : index
    %c0_205 = arith.constant 0 : index
    %227 = vector.load %arg11[%c0_204, %c0_205] : memref<36x256xf32, #tpu.memory_space<vmem>>, vector<36x256xf32>
    %cst_206 = arith.constant dense<0.000000e+00> : vector<2x256xf32>
    %228 = tpu.matmul %30, %227, %cst_206 {dimension_numbers = #tpu.dot_dimension_numbers<[1], [0], [0], [1], [0, 0, 1, 1], [], []>} : vector<2x36xf32>, vector<36x256xf32>, vector<2x256xf32> -> vector<2x256xf32>
    %229 = vector.broadcast %33 : vector<2x1xf32> to vector<2x256xf32>
    %230 = arith.addf %228, %229 : vector<2x256xf32>
    %c0_207 = arith.constant 0 : index
    %c17_208 = arith.constant 17 : index
    %231 = vector.load %arg12[%c0_207, %c17_208] : memref<2x290xf32, #tpu.memory_space<vmem>>, vector<2x256xf32>
    tpu.vector_store %arg12[%c0_207, %c17_208], %230 {strides = array<i32>} : memref<2x290xf32, #tpu.memory_space<vmem>>, vector<2x256xf32>,
    %c0_209 = arith.constant 0 : index
    %c0_210 = arith.constant 0 : index
    %232 = vector.load %arg12[%c0_209, %c0_210] : memref<2x290xf32, #tpu.memory_space<vmem>>, vector<2x256xf32>
    %cst_211 = arith.constant 0.000000e+00 : f32
    %233 = vector.shape_cast %18 : vector<1x256xi1> to vector<1x256xi1>
    %234 = vector.broadcast %233 : vector<1x256xi1> to vector<2x256xi1>
    %235 = vector.broadcast %cst_211 : f32 to vector<2x256xf32>
    %236 = arith.select %234, %232, %235 : vector<2x256xi1>, vector<2x256xf32>
    %c0_212 = arith.constant 0 : index
    %c0_213 = arith.constant 0 : index
    %237 = vector.load %arg13[%c0_212, %c0_213] : memref<18x256xf32, #tpu.memory_space<vmem>>, vector<2x256xf32>
    tpu.vector_store %arg13[%c0_212, %c0_213], %236 {strides = array<i32>} : memref<18x256xf32, #tpu.memory_space<vmem>>, vector<2x256xf32>,
    %c0_214 = arith.constant 0 : index
    %c1_215 = arith.constant 1 : index
    %238 = vector.load %arg12[%c0_214, %c1_215] : memref<2x290xf32, #tpu.memory_space<vmem>>, vector<2x256xf32>
    %c2_216 = arith.constant 2 : index
    %c0_217 = arith.constant 0 : index
    %239 = vector.load %arg13[%c2_216, %c0_217] : memref<18x256xf32, #tpu.memory_space<vmem>>, vector<2x256xf32>
    tpu.vector_store %arg13[%c2_216, %c0_217], %238 {strides = array<i32>} : memref<18x256xf32, #tpu.memory_space<vmem>>, vector<2x256xf32>,
    %c0_218 = arith.constant 0 : index
    %c2_219 = arith.constant 2 : index
    %240 = vector.load %arg12[%c0_218, %c2_219] : memref<2x290xf32, #tpu.memory_space<vmem>>, vector<2x256xf32>
    %cst_220 = arith.constant 0.000000e+00 : f32
    %241 = vector.shape_cast %20 : vector<1x256xi1> to vector<1x256xi1>
    %242 = vector.broadcast %241 : vector<1x256xi1> to vector<2x256xi1>
    %243 = vector.broadcast %cst_220 : f32 to vector<2x256xf32>
    %244 = arith.select %242, %240, %243 : vector<2x256xi1>, vector<2x256xf32>
    %c4_221 = arith.constant 4 : index
    %c0_222 = arith.constant 0 : index
    %245 = vector.load %arg13[%c4_221, %c0_222] : memref<18x256xf32, #tpu.memory_space<vmem>>, vector<2x256xf32>
    tpu.vector_store %arg13[%c4_221, %c0_222], %244 {strides = array<i32>} : memref<18x256xf32, #tpu.memory_space<vmem>>, vector<2x256xf32>,
    %c0_223 = arith.constant 0 : index
    %c16_224 = arith.constant 16 : index
    %246 = vector.load %arg12[%c0_223, %c16_224] : memref<2x290xf32, #tpu.memory_space<vmem>>, vector<2x256xf32>
    %cst_225 = arith.constant 0.000000e+00 : f32
    %247 = vector.shape_cast %18 : vector<1x256xi1> to vector<1x256xi1>
    %248 = vector.broadcast %247 : vector<1x256xi1> to vector<2x256xi1>
    %249 = vector.broadcast %cst_225 : f32 to vector<2x256xf32>
    %250 = arith.select %248, %246, %249 : vector<2x256xi1>, vector<2x256xf32>
    %c6_226 = arith.constant 6 : index
    %c0_227 = arith.constant 0 : index
    %251 = vector.load %arg13[%c6_226, %c0_227] : memref<18x256xf32, #tpu.memory_space<vmem>>, vector<2x256xf32>
    tpu.vector_store %arg13[%c6_226, %c0_227], %250 {strides = array<i32>} : memref<18x256xf32, #tpu.memory_space<vmem>>, vector<2x256xf32>,
    %c0_228 = arith.constant 0 : index
    %c17_229 = arith.constant 17 : index
    %252 = vector.load %arg12[%c0_228, %c17_229] : memref<2x290xf32, #tpu.memory_space<vmem>>, vector<2x256xf32>
    %c8_230 = arith.constant 8 : index
    %c0_231 = arith.constant 0 : index
    %253 = vector.load %arg13[%c8_230, %c0_231] : memref<18x256xf32, #tpu.memory_space<vmem>>, vector<2x256xf32>
    tpu.vector_store %arg13[%c8_230, %c0_231], %252 {strides = array<i32>} : memref<18x256xf32, #tpu.memory_space<vmem>>, vector<2x256xf32>,
    %c0_232 = arith.constant 0 : index
    %c18_233 = arith.constant 18 : index
    %254 = vector.load %arg12[%c0_232, %c18_233] : memref<2x290xf32, #tpu.memory_space<vmem>>, vector<2x256xf32>
    %cst_234 = arith.constant 0.000000e+00 : f32
    %255 = vector.shape_cast %20 : vector<1x256xi1> to vector<1x256xi1>
    %256 = vector.broadcast %255 : vector<1x256xi1> to vector<2x256xi1>
    %257 = vector.broadcast %cst_234 : f32 to vector<2x256xf32>
    %258 = arith.select %256, %254, %257 : vector<2x256xi1>, vector<2x256xf32>
    %c10_235 = arith.constant 10 : index
    %c0_236 = arith.constant 0 : index
    %259 = vector.load %arg13[%c10_235, %c0_236] : memref<18x256xf32, #tpu.memory_space<vmem>>, vector<2x256xf32>
    tpu.vector_store %arg13[%c10_235, %c0_236], %258 {strides = array<i32>} : memref<18x256xf32, #tpu.memory_space<vmem>>, vector<2x256xf32>,
    %c0_237 = arith.constant 0 : index
    %c32_238 = arith.constant 32 : index
    %260 = vector.load %arg12[%c0_237, %c32_238] : memref<2x290xf32, #tpu.memory_space<vmem>>, vector<2x256xf32>
    %cst_239 = arith.constant 0.000000e+00 : f32
    %261 = vector.shape_cast %18 : vector<1x256xi1> to vector<1x256xi1>
    %262 = vector.broadcast %261 : vector<1x256xi1> to vector<2x256xi1>
    %263 = vector.broadcast %cst_239 : f32 to vector<2x256xf32>
    %264 = arith.select %262, %260, %263 : vector<2x256xi1>, vector<2x256xf32>
    %c12_240 = arith.constant 12 : index
    %c0_241 = arith.constant 0 : index
    %265 = vector.load %arg13[%c12_240, %c0_241] : memref<18x256xf32, #tpu.memory_space<vmem>>, vector<2x256xf32>
    tpu.vector_store %arg13[%c12_240, %c0_241], %264 {strides = array<i32>} : memref<18x256xf32, #tpu.memory_space<vmem>>, vector<2x256xf32>,
    %c0_242 = arith.constant 0 : index
    %c33_243 = arith.constant 33 : index
    %266 = vector.load %arg12[%c0_242, %c33_243] : memref<2x290xf32, #tpu.memory_space<vmem>>, vector<2x256xf32>
    %c14_244 = arith.constant 14 : index
    %c0_245 = arith.constant 0 : index
    %267 = vector.load %arg13[%c14_244, %c0_245] : memref<18x256xf32, #tpu.memory_space<vmem>>, vector<2x256xf32>
    tpu.vector_store %arg13[%c14_244, %c0_245], %266 {strides = array<i32>} : memref<18x256xf32, #tpu.memory_space<vmem>>, vector<2x256xf32>,
    %c0_246 = arith.constant 0 : index
    %c34_247 = arith.constant 34 : index
    %268 = vector.load %arg12[%c0_246, %c34_247] : memref<2x290xf32, #tpu.memory_space<vmem>>, vector<2x256xf32>
    %cst_248 = arith.constant 0.000000e+00 : f32
    %269 = vector.shape_cast %20 : vector<1x256xi1> to vector<1x256xi1>
    %270 = vector.broadcast %269 : vector<1x256xi1> to vector<2x256xi1>
    %271 = vector.broadcast %cst_248 : f32 to vector<2x256xf32>
    %272 = arith.select %270, %268, %271 : vector<2x256xi1>, vector<2x256xf32>
    %c16_249 = arith.constant 16 : index
    %c0_250 = arith.constant 0 : index
    %273 = vector.load %arg13[%c16_249, %c0_250] : memref<18x256xf32, #tpu.memory_space<vmem>>, vector<2x256xf32>
    tpu.vector_store %arg13[%c16_249, %c0_250], %272 {strides = array<i32>} : memref<18x256xf32, #tpu.memory_space<vmem>>, vector<2x256xf32>,
    %c0_251 = arith.constant 0 : index
    %c0_252 = arith.constant 0 : index
    %274 = vector.load %arg13[%c0_251, %c0_252] : memref<18x256xf32, #tpu.memory_space<vmem>>, vector<18x256xf32>
    %cst_253 = arith.constant dense<0.000000e+00> : vector<2x256xf32>
    %275 = tpu.matmul %31, %274, %cst_253 {dimension_numbers = #tpu.dot_dimension_numbers<[1], [0], [0], [1], [0, 0, 1, 1], [], []>} : vector<2x18xf32>, vector<18x256xf32>, vector<2x256xf32> -> vector<2x256xf32>
    %276 = vector.broadcast %34 : vector<2x1xf32> to vector<2x256xf32>
    %277 = arith.addf %275, %276 : vector<2x256xf32>
    %c0_254 = arith.constant 0 : index
    %c17_255 = arith.constant 17 : index
    %278 = vector.load %arg14[%c0_254, %c17_255] : memref<2x290xf32, #tpu.memory_space<vmem>>, vector<2x256xf32>
    tpu.vector_store %arg14[%c0_254, %c17_255], %277 {strides = array<i32>} : memref<2x290xf32, #tpu.memory_space<vmem>>, vector<2x256xf32>,
    %c0_256 = arith.constant 0 : index
    %c0_257 = arith.constant 0 : index
    %279 = vector.load %arg14[%c0_256, %c0_257] : memref<2x290xf32, #tpu.memory_space<vmem>>, vector<2x256xf32>
    %cst_258 = arith.constant 0.000000e+00 : f32
    %280 = vector.shape_cast %18 : vector<1x256xi1> to vector<1x256xi1>
    %281 = vector.broadcast %280 : vector<1x256xi1> to vector<2x256xi1>
    %282 = vector.broadcast %cst_258 : f32 to vector<2x256xf32>
    %283 = arith.select %281, %279, %282 : vector<2x256xi1>, vector<2x256xf32>
    %c0_259 = arith.constant 0 : index
    %c0_260 = arith.constant 0 : index
    %284 = vector.load %arg15[%c0_259, %c0_260] : memref<18x256xf32, #tpu.memory_space<vmem>>, vector<2x256xf32>
    tpu.vector_store %arg15[%c0_259, %c0_260], %283 {strides = array<i32>} : memref<18x256xf32, #tpu.memory_space<vmem>>, vector<2x256xf32>,
    %c0_261 = arith.constant 0 : index
    %c1_262 = arith.constant 1 : index
    %285 = vector.load %arg14[%c0_261, %c1_262] : memref<2x290xf32, #tpu.memory_space<vmem>>, vector<2x256xf32>
    %c2_263 = arith.constant 2 : index
    %c0_264 = arith.constant 0 : index
    %286 = vector.load %arg15[%c2_263, %c0_264] : memref<18x256xf32, #tpu.memory_space<vmem>>, vector<2x256xf32>
    tpu.vector_store %arg15[%c2_263, %c0_264], %285 {strides = array<i32>} : memref<18x256xf32, #tpu.memory_space<vmem>>, vector<2x256xf32>,
    %c0_265 = arith.constant 0 : index
    %c2_266 = arith.constant 2 : index
    %287 = vector.load %arg14[%c0_265, %c2_266] : memref<2x290xf32, #tpu.memory_space<vmem>>, vector<2x256xf32>
    %cst_267 = arith.constant 0.000000e+00 : f32
    %288 = vector.shape_cast %20 : vector<1x256xi1> to vector<1x256xi1>
    %289 = vector.broadcast %288 : vector<1x256xi1> to vector<2x256xi1>
    %290 = vector.broadcast %cst_267 : f32 to vector<2x256xf32>
    %291 = arith.select %289, %287, %290 : vector<2x256xi1>, vector<2x256xf32>
    %c4_268 = arith.constant 4 : index
    %c0_269 = arith.constant 0 : index
    %292 = vector.load %arg15[%c4_268, %c0_269] : memref<18x256xf32, #tpu.memory_space<vmem>>, vector<2x256xf32>
    tpu.vector_store %arg15[%c4_268, %c0_269], %291 {strides = array<i32>} : memref<18x256xf32, #tpu.memory_space<vmem>>, vector<2x256xf32>,
    %c0_270 = arith.constant 0 : index
    %c16_271 = arith.constant 16 : index
    %293 = vector.load %arg14[%c0_270, %c16_271] : memref<2x290xf32, #tpu.memory_space<vmem>>, vector<2x256xf32>
    %cst_272 = arith.constant 0.000000e+00 : f32
    %294 = vector.shape_cast %18 : vector<1x256xi1> to vector<1x256xi1>
    %295 = vector.broadcast %294 : vector<1x256xi1> to vector<2x256xi1>
    %296 = vector.broadcast %cst_272 : f32 to vector<2x256xf32>
    %297 = arith.select %295, %293, %296 : vector<2x256xi1>, vector<2x256xf32>
    %c6_273 = arith.constant 6 : index
    %c0_274 = arith.constant 0 : index
    %298 = vector.load %arg15[%c6_273, %c0_274] : memref<18x256xf32, #tpu.memory_space<vmem>>, vector<2x256xf32>
    tpu.vector_store %arg15[%c6_273, %c0_274], %297 {strides = array<i32>} : memref<18x256xf32, #tpu.memory_space<vmem>>, vector<2x256xf32>,
    %c0_275 = arith.constant 0 : index
    %c17_276 = arith.constant 17 : index
    %299 = vector.load %arg14[%c0_275, %c17_276] : memref<2x290xf32, #tpu.memory_space<vmem>>, vector<2x256xf32>
    %c8_277 = arith.constant 8 : index
    %c0_278 = arith.constant 0 : index
    %300 = vector.load %arg15[%c8_277, %c0_278] : memref<18x256xf32, #tpu.memory_space<vmem>>, vector<2x256xf32>
    tpu.vector_store %arg15[%c8_277, %c0_278], %299 {strides = array<i32>} : memref<18x256xf32, #tpu.memory_space<vmem>>, vector<2x256xf32>,
    %c0_279 = arith.constant 0 : index
    %c18_280 = arith.constant 18 : index
    %301 = vector.load %arg14[%c0_279, %c18_280] : memref<2x290xf32, #tpu.memory_space<vmem>>, vector<2x256xf32>
    %cst_281 = arith.constant 0.000000e+00 : f32
    %302 = vector.shape_cast %20 : vector<1x256xi1> to vector<1x256xi1>
    %303 = vector.broadcast %302 : vector<1x256xi1> to vector<2x256xi1>
    %304 = vector.broadcast %cst_281 : f32 to vector<2x256xf32>
    %305 = arith.select %303, %301, %304 : vector<2x256xi1>, vector<2x256xf32>
    %c10_282 = arith.constant 10 : index
    %c0_283 = arith.constant 0 : index
    %306 = vector.load %arg15[%c10_282, %c0_283] : memref<18x256xf32, #tpu.memory_space<vmem>>, vector<2x256xf32>
    tpu.vector_store %arg15[%c10_282, %c0_283], %305 {strides = array<i32>} : memref<18x256xf32, #tpu.memory_space<vmem>>, vector<2x256xf32>,
    %c0_284 = arith.constant 0 : index
    %c32_285 = arith.constant 32 : index
    %307 = vector.load %arg14[%c0_284, %c32_285] : memref<2x290xf32, #tpu.memory_space<vmem>>, vector<2x256xf32>
    %cst_286 = arith.constant 0.000000e+00 : f32
    %308 = vector.shape_cast %18 : vector<1x256xi1> to vector<1x256xi1>
    %309 = vector.broadcast %308 : vector<1x256xi1> to vector<2x256xi1>
    %310 = vector.broadcast %cst_286 : f32 to vector<2x256xf32>
    %311 = arith.select %309, %307, %310 : vector<2x256xi1>, vector<2x256xf32>
    %c12_287 = arith.constant 12 : index
    %c0_288 = arith.constant 0 : index
    %312 = vector.load %arg15[%c12_287, %c0_288] : memref<18x256xf32, #tpu.memory_space<vmem>>, vector<2x256xf32>
    tpu.vector_store %arg15[%c12_287, %c0_288], %311 {strides = array<i32>} : memref<18x256xf32, #tpu.memory_space<vmem>>, vector<2x256xf32>,
    %c0_289 = arith.constant 0 : index
    %c33_290 = arith.constant 33 : index
    %313 = vector.load %arg14[%c0_289, %c33_290] : memref<2x290xf32, #tpu.memory_space<vmem>>, vector<2x256xf32>
    %c14_291 = arith.constant 14 : index
    %c0_292 = arith.constant 0 : index
    %314 = vector.load %arg15[%c14_291, %c0_292] : memref<18x256xf32, #tpu.memory_space<vmem>>, vector<2x256xf32>
    tpu.vector_store %arg15[%c14_291, %c0_292], %313 {strides = array<i32>} : memref<18x256xf32, #tpu.memory_space<vmem>>, vector<2x256xf32>,
    %c0_293 = arith.constant 0 : index
    %c34_294 = arith.constant 34 : index
    %315 = vector.load %arg14[%c0_293, %c34_294] : memref<2x290xf32, #tpu.memory_space<vmem>>, vector<2x256xf32>
    %cst_295 = arith.constant 0.000000e+00 : f32
    %316 = vector.shape_cast %20 : vector<1x256xi1> to vector<1x256xi1>
    %317 = vector.broadcast %316 : vector<1x256xi1> to vector<2x256xi1>
    %318 = vector.broadcast %cst_295 : f32 to vector<2x256xf32>
    %319 = arith.select %317, %315, %318 : vector<2x256xi1>, vector<2x256xf32>
    %c16_296 = arith.constant 16 : index
    %c0_297 = arith.constant 0 : index
    %320 = vector.load %arg15[%c16_296, %c0_297] : memref<18x256xf32, #tpu.memory_space<vmem>>, vector<2x256xf32>
    tpu.vector_store %arg15[%c16_296, %c0_297], %319 {strides = array<i32>} : memref<18x256xf32, #tpu.memory_space<vmem>>, vector<2x256xf32>,
    %c0_298 = arith.constant 0 : index
    %c0_299 = arith.constant 0 : index
    %321 = vector.load %arg15[%c0_298, %c0_299] : memref<18x256xf32, #tpu.memory_space<vmem>>, vector<18x256xf32>
    %cst_300 = arith.constant dense<0.000000e+00> : vector<1x256xf32>
    %322 = tpu.matmul %32, %321, %cst_300 {dimension_numbers = #tpu.dot_dimension_numbers<[1], [0], [0], [1], [0, 0, 1, 1], [], []>} : vector<1x18xf32>, vector<18x256xf32>, vector<1x256xf32> -> vector<1x256xf32>
    %323 = vector.broadcast %35 : vector<1x1xf32> to vector<1x256xf32>
    %324 = arith.addf %322, %323 : vector<1x256xf32>
    %c0_301 = arith.constant 0 : index
    %c0_302 = arith.constant 0 : index
    %c256_303 = arith.constant 256 : index
    %325 = vector.load %arg9[%c0_301, %c0_302, %c256_303] : memref<1x1x512xf32, #tpu.memory_space<vmem>>, vector<1x1x256xf32>
    %326 = vector.shape_cast %325 : vector<1x1x256xf32> to vector<1x256xf32>
    %327 = vector.shape_cast %324 : vector<1x256xf32> to vector<1x1x256xf32>
    tpu.vector_store %arg9[%c0_301, %c0_302, %c256_303], %327 {strides = array<i32>} : memref<1x1x512xf32, #tpu.memory_space<vmem>>, vector<1x1x256xf32>,
    return
  }
  func.func @transform_0(%arg0: i32, %arg1: i32) -> (i32, i32, i32) {
    %c0_i32 = arith.constant 0 : i32
    %c0_i32_0 = arith.constant 0 : i32
    return %arg0, %c0_i32, %arg1 : i32, i32, i32
  }
  func.func @transform_1(%arg0: i32, %arg1: i32) -> (i32, i32) {
    %c0_i32 = arith.constant 0 : i32
    %c0_i32_0 = arith.constant 0 : i32
    %c0_i32_1 = arith.constant 0 : i32
    return %c0_i32, %c0_i32_0 : i32, i32
  }
  func.func @transform_2(%arg0: i32, %arg1: i32) -> (i32, i32) {
    %c0_i32 = arith.constant 0 : i32
    %c0_i32_0 = arith.constant 0 : i32
    %c0_i32_1 = arith.constant 0 : i32
    return %c0_i32, %c0_i32_0 : i32, i32
  }
  func.func @transform_3(%arg0: i32, %arg1: i32) -> (i32, i32) {
    %c0_i32 = arith.constant 0 : i32
    %c0_i32_0 = arith.constant 0 : i32
    %c0_i32_1 = arith.constant 0 : i32
    return %c0_i32, %c0_i32_0 : i32, i32
  }
  func.func @transform_4(%arg0: i32, %arg1: i32) -> (i32, i32) {
    %c0_i32 = arith.constant 0 : i32
    %c0_i32_0 = arith.constant 0 : i32
    %c0_i32_1 = arith.constant 0 : i32
    return %c0_i32, %c0_i32_0 : i32, i32
  }
  func.func @transform_5(%arg0: i32, %arg1: i32) -> (i32, i32) {
    %c0_i32 = arith.constant 0 : i32
    %c0_i32_0 = arith.constant 0 : i32
    %c0_i32_1 = arith.constant 0 : i32
    return %c0_i32, %c0_i32_0 : i32, i32
  }
  func.func @transform_6(%arg0: i32, %arg1: i32) -> (i32, i32) {
    %c0_i32 = arith.constant 0 : i32
    %c0_i32_0 = arith.constant 0 : i32
    %c0_i32_1 = arith.constant 0 : i32
    return %c0_i32, %c0_i32_0 : i32, i32
  }
  func.func @transform_7(%arg0: i32, %arg1: i32) -> (i32, i32, i32) {
    %c0_i32 = arith.constant 0 : i32
    %c0_i32_0 = arith.constant 0 : i32
    return %arg0, %c0_i32, %arg1 : i32, i32, i32
  }
}

</mosaic_0001>

<bundles_post_ra>
// kernel: tpu_custom_call.1
= control target key start
LH: loop header
LB: loop body
LE: loop exit
PB: predicated region body
PF: predicated region fallthrough
CT: control target
= control target key end

     0   :  { %s3979_s0 = inlined_call_operand.hbm [shape: f32[2,4,1024], index: 0, kind: input, shape index: {}]   ;;  %s3980_s1 = inlined_call_operand.vmem [shape: f32[2,36], index: 1, kind: input, shape index: {}]   ;;  %s3981_s2 = inlined_call_operand.vmem [shape: f32[2,1], index: 2, kind: input, shape index: {}]   ;;  %s3982_s3 = inlined_call_operand.vmem [shape: f32[2,18], index: 3, kind: input, shape index: {}]   ;;  %s3983_s4 = inlined_call_operand.vmem [shape: f32[2,1], index: 4, kind: input, shape index: {}]   ;;  %s3984_s5 = inlined_call_operand.vmem [shape: f32[1,18], index: 5, kind: input, shape index: {}]   ;;  %s3985_s6 = inlined_call_operand.<no memory space> [shape: f32[1,1], index: 6, kind: input, shape index: {}]   ;;  %s3986_s7 = inlined_call_operand.hbm [shape: f32[2,1,1024], index: 7, kind: output, shape index: {}]  }
   0x1   :  { %v12_v0 = vstv %s3985_s6 }
   0x2   :  { %13 = vst [vmem:[#allocation8] sm:$0x1] %v12_v0 }
   0x3   :  { %14 = vsyncpa [#allocation10], 0 }
   0x4   :  { %16 = vsyncpa [#allocation10 + $0x1], 0 }
   0x5   :  { %17 = vsyncpa [#allocation11], 0 }
   0x6   :  { %19 = vsyncpa [#allocation11 + $0x1], 0  ;;  %s3049_s26 = smov 0   ;;  %s3051_s27 = smov 0  }
   0x7   :  { %s3053_s28 = smov 0   ;;  %s3055_s29 = smov 0  }
   0x8   :  { %s3057_s30 = smov 0   ;;  %s3059_s8 = smov 0  }
   0x9   :  { %s3061_s9 = smov 0   ;;  %s3063_s6 = smov 0  }
   0xa LB: > { %3998 = sst [smem:[#allocation15_spill]] %s2961_s26  ;;  %s2657_s10 = sadd.s32 4294967295, %s2989_s6   ;;  %s2989_s6 = sphi %s3063_s6, %s25_s6   ;;  %s2985_s9 = sphi %s3061_s9, %s4061_s9   ;;  %s2981_s8 = sphi %s3059_s8, %s4060_s8   ;;  %s2977_s30 = sphi %s3057_s30, %s4059_s30   ;;  %s2973_s29 = sphi %s3055_s29, %s4058_s29   ;;  %s2969_s28 = sphi %s3053_s28, %s4057_s28   ;;  %s2965_s27 = sphi %s3051_s27, %s4056_s27   ;;  %s2961_s26 = sphi %s3049_s26, %s4055_s26  }
   0xb   : > { %s2658_s11 = sadd.s32 4294967294, %s2989_s6   ;;  %s34_s12 = sadd.s32 1, %s2981_s8 }
   0xc   : > { %s37_s13 = sadd.s32 1, %s2985_s9  ;;  %p35_p0 = scmp.ge.s32.totalorder %s34_s12, 2 }
   0xd   : > { %s46_s14 = sadd.s32 1, %s2969_s28  ;;  %p53_p1 = scmp.ne.s32.totalorder %s2969_s28, %s2965_s27 }
   0xe   : > { %p54_p2 = scmp.eq.s32.totalorder %s2989_s6, 0  ;;  %s4063_s12 = smov (%p35_p0, %s34_s12), 0 }
   0xf   : > { %3999 = sst [smem:[#allocation16_spill]] %s4063_s12  ;;  %s4065_s13 = smov (!%p35_p0, %s37_s13), %s2985_s9 }
  0x10   : > { %s42_s15 = ssub.s32 %s2981_s8, %s4063_s12  ;;  %p3102_p3 = por %p54_p2, %p53_p1 }
  0x11   : > { %p39_p4 = scmp.ge.s32.totalorder %s4065_s13, 2  ;;  %p59_p5 = scmp.ne.s32.totalorder %s2965_s27, %s2961_s26 }
  0x12   : > { %p60_p6 = scmp.eq.s32.totalorder %s2657_s10, 0  ;;  %p211_p7 = scmp.eq.s32.totalorder %s2657_s10, 3 }
  0x13   : > { %s4067_s13 = smov (%p39_p4, %s4065_s13), 0  ;;  %p217_p10 = scmp.eq.s32.totalorder %s2658_s11, 3 }
  0x14   : > { %4001 = sst [smem:[#allocation17_spill]] %s4067_s13  ;;  %p3110_p8 = por %p60_p6, %p59_p5 }
  0x15   : > { %p3114_p9 = por %p211_p7, %p53_p1  ;;  %s41_s19 = ssub.s32 %s2985_s9, %s4067_s13 }
  0x16   : > { %s43_s20 = sor.u32 %s42_s15, %s41_s19  ;;  %p3120_p12 = por %p217_p10, %p59_p5 }
  0x17   : > { %s4003_s18 = scalar_select %p3114_p9, 1, 0 }
  0x18   : > { %p44_p11 = scmp.eq.s32.totalorder %s43_s20, 0  ;;  %p2740_p13 = scmp.lt.s32.totalorder %s2989_s6, 4 }
  0x19   : > { %s4004_s21 = scalar_select %p3120_p12, 1, 0 }
  0x1a   : > { %s255_s22 = sand.u32 1, %s2969_s28   ;;  %s2662_s25 = sshll.u32 %s2981_s8, 2 }
  0x1b   : > { %s3127_s23 = scalar_select %p44_p11, %s2969_s28, %s46_s14  }
  0x1c   : > { %s2661_s24 = sshll.u32 %s255_s22, 4  ;;  %s2663_s10 = sshll.u32 %s2985_s9, 3 }
  0x1d   : > { %s259_s12 = scalar_lea.vmem [#allocation9], %s2661_s24  ;;  %s265_s13 = sadd.s32 %s2663_s10, %s2662_s25 }
  0x1e   : > { %s269_s26 = sshll.u32 %s259_s12, 4  ;;  %s2664_s11 = sshll.u32 %s265_s13, 6  ;;  %s3131_s26 = int_to_ptr.vmem [resolvable:$true] %s269_s26 }
  0x1f   : > { %p3135_p0 = pnand %p2740_p13, %p3102_p3  ;;  %s3142_s14 = scalar_lea.hbm %s3979_s0, %s2664_s11 }
  0x20   : > { %s256_s12 = scalar_lea.sflag [#allocation10], %s255_s22  ;;  %s2861_s13 = scalar_lea.hbm %s3142_s14, 256 }
  0x21   : > { %p2862_p4 = scmp.ne.s32.totalorder %s3142_s14, %s2861_s13  ;;  %p2863_p3 = pneg %p3135_p0 }
  0x22   : > { %s2866_s25 = scalar_lea.hbm %s3979_s0, 1024  ;;  %p2867_p7 = scmp.lt.u32.totalorder %s3142_s14, %s3979_s0 }
  0x23   : > { %p2864_p5 = pnand %p2863_p3, %p2862_p4  ;;  %p2868_p10 = scmp.lt.u32.totalorder %s2866_s25, %s2861_s13 }
  0x24   : > { %p2870_p13 = scmp.lt.u32.totalorder %s2861_s13, %s3142_s14 }
  0x25   : > { %p2865_p6 = pneg %p2864_p5  ;;  %p2869_p11 = por %p2868_p10, %p2867_p7 }
  0x27   : > { %p2871_p1 = por %p2870_p13, %p2869_p11 }
  0x29   : > { %p2872_p2 = pnand %p2871_p1, %p2865_p6 }
  0x2b   : > { %2875 = shalt.err (!%p2872_p2)
}
  0x2c   : > { %s2876_s22 = scalar_lea.vmem %s3131_s26, 256  ;;  %s2991_s19 = smov [#allocation9]  }
  0x2d   : > { %p2877_p4 = scmp.ne.s32.totalorder %s3131_s26, %s2876_s22  ;;  %s2881_s20 = sshll.u32 %s2991_s19, 4  ;;  %s2882_s20 = int_to_ptr.vmem [resolvable:$false] %s2881_s20 }
  0x2e   : > { %s2883_s16 = scalar_lea.vmem %s2882_s20, 512  ;;  %p2884_p9 = scmp.lt.s32.totalorder %s3131_s26, %s2882_s20 }
  0x2f   : > { %p2879_p5 = pnand %p2877_p4, %p2863_p3  ;;  %p2885_p7 = scmp.lt.s32.totalorder %s2883_s16, %s2876_s22 }
  0x31   : > { %p2880_p12 = pneg %p2879_p5  ;;  %p2886_p10 = por %p2885_p7, %p2884_p9 }
  0x33   : > { %p2887_p11 = pnand %p2886_p10, %p2880_p12 }
  0x35   : > { %2890 = shalt.err (!%p2887_p11)
}
  0x36   : > { %2735 = dma.hbm_to_vmem [thread:$0]  (!%p3135_p0), %s3142_s14, 256, %s3131_s26, %s256_s12  }
  0x37   : > { %p4006_p1 = scmp.lt.s32.totalorder %s2989_s6, 5  ;;  %p4007_p2 = scmp.ge.s32.totalorder %s2989_s6, 1 }
  0x39   : > { %p275_p3 = pnand %p4007_p2, %p4006_p1 }
  0x3a   : > { %s3176_s13 = sand.u32 (!%p275_p3), 1, %s2965_s27  }
  0x3b   : > { %278 = sbr.rel (%p275_p3) target bundleno = 2323 (0x913), region = 48  ;;  %s2666_s24 = sshll.u32 (!%p275_p3), %s3176_s13, 4 }
  0x3c   : > { %s281_s25 = scalar_lea.sflag (!%p275_p3), [#allocation10], %s3176_s13  ;;  %s3180_s10 = scalar_lea.vmem (!%p275_p3), [#allocation9], %s2666_s24 }
  0x42   : > { %2952 = dma.done.wait (%p3110_p8), %s281_s25, 256  }
  0x43   : > { %2954 = vsyncadd (%p3110_p8), %s281_s25, 4294967040  ;;  %vm348_vm0 = vcmask 134144   ;;  %vm350_vm1 = vcmask 273544   ;;  %v2992_v1 = vmov 0.0   ;;  %v364_v2 = vld [vmem:[%s3180_s10] sm:$0xff]  ;;  %s2993_s26 = smov 17   ;;  %v317_v3 = vlaneseq }
  0x44   : > { %349 = vst.msk [vmem:[#allocation2] sm:$0xf] %vm348_vm0, %v2992_v1  ;;  %652 = vmatprep.mubr.f32.mxu0 %v2992_v1  ;;  %1057 = vmatprep.mubr.f32.mxu1 %v2992_v1  ;;  %vm373_vm2 = vcmask 1043592   ;;  %vm374_vm3 = vcmask 1047556   ;;  %vm369_vm4 = vcmask 138240   ;;  %s2994_s17 = smov 96  }
  0x45   : > { %351 = vst.msk [vmem:[#allocation2 + $0x8] sm:$0xf] %vm350_vm1, %v2992_v1  ;;  %366 = vrot.lane.b32.xlu0 %v364_v2, %s2993_s26  ;;  %v3194_v4 = vand.u32 127, %v317_v3  ;;  %vm3196_vm5 = vmor %vm374_vm3, %vm373_vm2  ;;  %s2995_s15 = smov 112   ;;  %s2996_s14 = smov 111   ;;  %v3002_v27 = vmov 0  }
  0x46   : > { %s2997_s12 = smov 126   ;;  %s2998_s11 = smov 110   ;;  %2819 = vset.pattern.permute.xlu1 %v3002_v27  ;;  %v361_v28 = vld [vmem:[%s3981_s2] sm:$0x3]  ;;  %2820 = vset.pattern.permute.xlu0 %v3002_v27  ;;  %vm402_vm8 = vcmask 1039360   ;;  %vm3994_vm9 = vcmask 777216  }
  0x47   : > { %v3203_v9 = vadd.s32 128, %v3194_v4  ;;  %v324_v10 = vand.u32 15, %v3194_v4  ;;  %s2999_s22 = smov 127   ;;  %s3000_s19 = smov 95   ;;  %v1489_v29 = vld [vmem:[%s3180_s10 + $0x8] sm:$0xff]  ;;  %vm444_vm10 = vcmask 916480  }
  0x48   : > { %s3001_s20 = smov 94   ;;  %vm424_vm11 = vcmask 1031168   ;;  %vm3997_vm14 = vcmask 900096   ;;  %vm3996_vm15 = vcmask 785408   ;;  %vm3995_vm1 = vcmask 908288   ;;  %p4050_p9 = scmp.ne.s32.totalorder %s4003_s18, 0 }
  0x49   : > { %v331_v11 = vand.u32 15, %v3203_v9  ;;  %vm3211_vm6 = vcmp.ge.s32.totalorder %v324_v10, 1  ;;  %vm3269_vm12 = vcmp.le.s32.totalorder %v324_v10, 14  ;;  %vm3991_vm2 = vcmask 769024   ;;  %s3005_s10 = smov [#allocation12]  }
  0x4a   : > { %vm3993_vm3 = vcmask 1043456   ;;  %v3004_v52 = vmov 1966171168   ;;  %s2895_s16 = sshll.u32 %s3005_s10, 4  ;;  %s2896_s16 = int_to_ptr.vmem [resolvable:$false] %s2895_s16 }
  0x4b   : > { %vm3219_vm7 = vcmp.ge.s32.totalorder %v331_v11, 1  ;;  %vm3275_vm13 = vcmp.le.s32.totalorder %v331_v11, 14  ;;  %s2897_s24 = scalar_lea.vmem %s2896_s16, 128 }
  0xb7   : > { %v367_v5 = vpop.permute.xlu0 %366 }
  0xb8   : > { %v368_v7 = vrot.slane %v367_v5, 4 }
  0xba   : > { %v370_v8 = vsel %vm369_vm4, %v368_v7, %v367_v5  ;;  %377 = vst.msk [vmem:[#allocation2 + $0x8] sm:$0xf] %vm348_vm0, %v368_v7 }
  0xbb   : > { %376 = vst.msk [vmem:[#allocation2] sm:$0xff] %vm3196_vm5, %v370_v8 }
  0xc1   : > { %v504_v12 = vld [vmem:[#allocation2 + $0x8] sm:$0xf] }
  0xc2   : > { %v434_v13 = vld [vmem:[#allocation2 + $0x8] sm:$0xf]  ;;  %512 = vrot.lane.b32.xlu0 %v504_v12, %s2994_s17  ;;  %v390_v15 = vld [vmem:[#allocation2] sm:$0xff] }
  0xc3   : > { %442 = vrot.lane.b32.xlu1 %v434_v13, %s2995_s15  ;;  %v437_v17 = vcombine.high %v390_v15, %v390_v15  ;;  %v386_v18 = vsel %vm3211_vm6, %v390_v15, 0.0  ;;  %v460_v19 = vld [vmem:[#allocation2 + $0x8] sm:$0xf]  ;;  %v394_v25 = vcombine.low %v390_v15, %v390_v15 }
  0xc4   : > { %v410_v20 = vld [vmem:[#allocation2 + $0x8] sm:$0xf]  ;;  %388 = vst [vmem:[#allocation3] sm:$0xf] %v386_v18 }
  0xc5   : > { %v387_v21 = vsel %vm3219_vm7, %v437_v17, 0.0  ;;  %v478_v22 = vld [vmem:[#allocation2 + $0x8] sm:$0xf] }
  0xc6   : > { %468 = vrot.lane.b32.xlu0 %v460_v19, %s2996_s14  ;;  %389 = vst [vmem:[#allocation3 + $0x8] sm:$0xf] %v387_v21  ;;  %v2821_v23 = vld [vmem:[#allocation2 + $0x8] ss:$0 sps:$4 sm:$0xff]  }
  0xc7   : > { %422 = vrot.lane.b32.xlu1 %v410_v20, %s2997_s12  ;;  %v2822_v24 = vld [vmem:[#allocation2 + $0x8] ss:$0 sps:$4 sm:$0xff]  }
  0xc8   : > { %v543_v26 = vld [vmem:[#allocation2 + $0x8] sm:$0xf] }
  0xca   : > { %398 = vrot.lane.b32.xlu0 %v390_v15, %s2999_s22 }
  0xcb   : > { %486 = vrot.lane.b32.xlu1 %v478_v22, %s2998_s11 }
  0xce   : > { %418 = vrot.lane.b32.xlu0 %v390_v15, %s2997_s12 }
  0xcf   : > { %438 = vrot.lane.b32.xlu1 %v390_v15, %s2995_s15 }
  0xd2   : > { %482 = vrot.lane.b32.xlu0 %v390_v15, %s2998_s11 }
  0xd3   : > { %508 = vrot.lane.b32.xlu1 %v390_v15, %s2994_s17 }
  0xd6   : > { %531 = vrot.lane.b32.xlu0 %v390_v15, %s3000_s19 }
  0xd7   : > { %400 = vrot.lane.b32.xlu1 %v2821_v23, %s2999_s22 }
  0xda   : > { %440 = vrot.lane.b32.xlu0 %v437_v17, %s2995_s15 }
  0xdb   : > { %533 = vrot.lane.b32.xlu1 %v2822_v24, %s3000_s19 }
  0xde   : > { %420 = vrot.lane.b32.xlu0 %v437_v17, %s2997_s12 }
  0xdf   : > { %396 = vrot.lane.b32.xlu1 %v394_v25, %s2999_s22 }
  0xe2   : > { %484 = vrot.lane.b32.xlu0 %v437_v17, %s2998_s11 }
  0xe3   : > { %510 = vrot.lane.b32.xlu1 %v437_v17, %s2994_s17 }
  0xe6   : > { %464 = vrot.lane.b32.xlu0 %v390_v15, %s2996_s14 }
  0xe7   : > { %466 = vrot.lane.b32.xlu1 %v437_v17, %s2996_s14 }
  0xea   : > { %549 = vrot.lane.b32.xlu0 %v437_v17, %s3001_s20 }
  0xeb   : > { %529 = vrot.lane.b32.xlu1 %v394_v25, %s3000_s19 }
  0xee   : > { %547 = vrot.lane.b32.xlu0 %v390_v15, %s3001_s20 }
  0xef   : > { %551 = vrot.lane.b32.xlu1 %v543_v26, %s3001_s20 }
  0xf3   : > { %574 = vperm.xlu1 %2819, %v361_v28  }
  0xf7   : > { %1491 = vrot.lane.b32.xlu1 %v1489_v29, %s2993_s26 }
 0x134   : > { %v513_v30 = vpop.permute.xlu0 %512 }
 0x135   : > { %v443_v31 = vpop.permute.xlu1 %442 }
 0x138   : > { %v3254_v32 = vpop.permute.xlu0 %468 }
 0x139   : > { %v423_v33 = vpop.permute.xlu1 %422 }
 0x13c   : > { %v399_v35 = vpop.permute.xlu0 %398 }
 0x13d   : > { %v487_v34 = vpop.permute.xlu1 %486 }
 0x140   : > { %v419_v37 = vpop.permute.xlu0 %418 }
 0x141   : > { %v439_v36 = vpop.permute.xlu1 %438 }
 0x144   : > { %v483_v39 = vpop.permute.xlu0 %482 }
 0x145   : > { %v509_v38 = vpop.permute.xlu1 %508 }
 0x148   : > { %v3256_v41 = vpop.permute.xlu0 %531 }
 0x149   : > { %v401_v40 = vpop.permute.xlu1 %400 }
 0x14a   : > { %v404_v42 = vsel %vm402_vm8, %v399_v35, %v401_v40 }
 0x14b   : > { %408 = vst [vmem:[#allocation3 + $0x8] sm:$0xf0] %v404_v42 }
 0x14c   : > { %v441_v44 = vpop.permute.xlu0 %440 }
 0x14d   : > { %v534_v43 = vpop.permute.xlu1 %533  ;;  %v445_v46 = vsel %vm444_vm10, %v439_v36, %v441_v44  ;;  %v446_v47 = vsel %vm444_vm10, %v441_v44, %v443_v31 }
 0x14e   : > { %v537_v45 = vsel %vm3994_vm9, %v3256_v41, %v534_v43  ;;  %v449_v48 = vsel %vm3211_vm6, %v445_v46, 0.0  ;;  %v450_v49 = vsel %vm3219_vm7, %v446_v47, 0.0 }
 0x14f   : > { %541 = vst [vmem:[#allocation3 + $0x38] sm:$0xf0] %v537_v45  ;;  %v453_v50 = vrot.slane %v449_v48, 4  ;;  %v454_v51 = vrot.slane %v450_v49, 4 }
 0x150   : > { %v421_v54 = vpop.permute.xlu0 %420 }
 0x151   : > { %v397_v55 = vpop.permute.xlu1 %396  ;;  %457 = vst [vmem:[#allocation3 + $0x10] sm:$0xf0] %v453_v50  ;;  %458 = vst [vmem:[#allocation3 + $0x18] sm:$0xf0] %v454_v51  ;;  %v425_v56 = vsel %vm424_vm11, %v419_v37, %v421_v54  ;;  %v426_v57 = vsel %vm424_vm11, %v421_v54, %v423_v33 }
 0x152   : > { %v403_v58 = vsel %vm402_vm8, %v397_v55, %v399_v35  ;;  %v429_v59 = vsel %vm3269_vm12, %v425_v56, 0.0  ;;  %v430_v60 = vsel %vm3275_vm13, %v426_v57, 0.0  ;;  %v563_v19 = vld [vmem:[#allocation3 + $0x8] sm:$0xff] }
 0x153   : > { %407 = vst [vmem:[#allocation3] sm:$0xf0] %v403_v58  ;;  %431 = vst [vmem:[#allocation3 + $0x10] sm:$0xf] %v429_v59 }
 0x154   : > { %432 = vst [vmem:[#allocation3 + $0x18] sm:$0xf] %v430_v60  ;;  %v485_v61 = vpop.permute.xlu0 %484 }
 0x155   : > { %v511_v62 = vpop.permute.xlu1 %510  ;;  %v489_v63 = vsel %vm3997_vm14, %v483_v39, %v485_v61  ;;  %v490_v0 = vsel %vm3997_vm14, %v485_v61, %v487_v34  ;;  %v3312_v39 = vld [vmem:[%s3980_s1] sm:$0x3] }
 0x156   : > { %v515_v2 = vsel %vm3996_vm15, %v509_v38, %v511_v62  ;;  %v516_v4 = vsel %vm3996_vm15, %v511_v62, %v513_v30  ;;  %v493_v5 = vsel %vm3269_vm12, %v489_v63, 0.0  ;;  %v494_v7 = vsel %vm3275_vm13, %v490_v0, 0.0 }
 0x157   : > { %v519_v8 = vsel %vm3211_vm6, %v515_v2, 0.0  ;;  %v520_v9 = vsel %vm3219_vm7, %v516_v4, 0.0  ;;  %v497_v10 = vrot.slane %v493_v5, 4  ;;  %v498_v11 = vrot.slane %v494_v7, 4 }
 0x158   : > { %521 = vst [vmem:[#allocation3 + $0x30] sm:$0xf] %v519_v8  ;;  %522 = vst [vmem:[#allocation3 + $0x38] sm:$0xf] %v520_v9  ;;  %v465_v12 = vpop.permute.xlu0 %464  ;;  %v3003_v4 = vmov 1983009808  }
 0x159   : > { %v467_v13 = vpop.permute.xlu1 %466  ;;  %501 = vst [vmem:[#allocation3 + $0x20] sm:$0xf0] %v497_v10  ;;  %502 = vst [vmem:[#allocation3 + $0x28] sm:$0xf0] %v498_v11  ;;  %v663_v5 = vunpack.c.l.s4 %v3003_v4  ;;  %v3367_v8 = vshrl.u32 %v317_v3, 7 }
 0x15a   : > { %v471_v15 = vsel %vm3995_vm1, %v465_v12, %v467_v13  ;;  %v472_v17 = vsel %vm3995_vm1, %v467_v13, %v3254_v32  ;;  %v562_v18 = vld [vmem:[#allocation3] sm:$0xff]  ;;  %v564_v21 = vld [vmem:[#allocation3 + $0x10] sm:$0xff] }
 0x15b   : > { %475 = vst [vmem:[#allocation3 + $0x20] sm:$0xf] %v471_v15  ;;  %476 = vst [vmem:[#allocation3 + $0x28] sm:$0xf] %v472_v17  ;;  %v565_v20 = vld [vmem:[#allocation3 + $0x18] sm:$0xff]  ;;  %v2698_v23 = vpack.c.bf16 %v564_v21, %v562_v18  ;;  %v664_v7 = vunpack.c.0.s8 %v663_v5  ;;  %v1384_v53 = vsub.s32 0, %v3367_v8 }
 0x15c   : > { %v2696_v22 = vpack.c.bf16 %v565_v20, %v563_v19  ;;  %v550_v24 = vpop.permute.xlu0 %549 }
 0x15d   : > { %v530_v25 = vpop.permute.xlu1 %529  ;;  %v3371_v12 = vsub.s32 %v664_v7, %v3367_v8 }
 0x15e   : > { %v536_v26 = vsel %vm3994_vm9, %v530_v25, %v3256_v41  ;;  %2697 = vmatprep.subr.bf16.mxu0 %v2696_v22 }
 0x15f   : > { %540 = vst [vmem:[#allocation3 + $0x30] sm:$0xf0] %v536_v26  ;;  %2699 = vmatpush1.bf16.msra.mxu0 %v2698_v23  ;;  %v569_v32 = vld [vmem:[#allocation3 + $0x38] sm:$0xff] }
 0x160   : > { %v548_v27 = vpop.permute.xlu0 %547 }
 0x161   : > { %v552_v28 = vpop.permute.xlu1 %551  ;;  %v554_v29 = vsel %vm3991_vm2, %v548_v27, %v550_v24 }
 0x162   : > { %v555_v30 = vsel %vm3991_vm2, %v550_v24, %v552_v28  ;;  %v567_v31 = vld [vmem:[#allocation3 + $0x28] sm:$0xff]  ;;  %v558_v33 = vsel %vm3269_vm12, %v554_v29, 0.0  ;;  %v566_v36 = vld [vmem:[#allocation3 + $0x20] sm:$0xff]  ;;  %vm3992_vm2 = vcmask 293888  }
 0x163   : > { %v559_v34 = vsel %vm3275_vm13, %v555_v30, 0.0  ;;  %v2700_v35 = vpack.c.bf16 %v569_v32, %v567_v31  ;;  %560 = vst [vmem:[#allocation3 + $0x40] sm:$0xf] %v558_v33 }
 0x164   : > { %561 = vst [vmem:[#allocation3 + $0x48] sm:$0xf] %v559_v34 }
 0x165   : > { %2701 = vmatprep.subr.bf16.mxu0 %v2700_v35 }
 0x166   : > { %v568_v37 = vld [vmem:[#allocation3 + $0x30] sm:$0xff] }
 0x167   : > { %v2702_v38 = vpack.c.bf16 %v568_v37, %v566_v36 }
 0x169   : > { %2703 = vmatpush1.bf16.msra.mxu0 %v2702_v38 }
 0x16a   : > { %v570_v41 = vld [vmem:[#allocation3 + $0x40] sm:$0xf] }
 0x16b   : > { %v571_v40 = vld [vmem:[#allocation3 + $0x48] sm:$0xf] }
 0x16c   : > { %2668 = vmatprep.subr.msk.mxu0 %vm3993_vm3, %v571_v40 }
 0x16d   : > { %2669 = vmatpush1.msk.msra.mxu0 %vm3993_vm3, %v570_v41  ;;  %vm677_vm3 = vcmask 136196  }
 0x16e   : > { %2670 = vmatmul.mubr.msk.f32.vlgmr.msra.gmra.mrb[0].mxu0 %vm3992_vm2, %v3312_v39 }
 0x16f   : > { %1747 = vmatprep.mubr.f32.mxu0 %v2992_v1 }
 0x172   : > { %v3319_v42 = vpop.permute.xlu1 %574 }
 0x176   : > { %v1492_v43 = vpop.permute.xlu1 %1491 }
 0x177   : > { %v1493_v44 = vrot.slane %v1492_v43, 4 }
 0x179   : > { %v1494_v45 = vsel %vm369_vm4, %v1493_v44, %v1492_v43  ;;  %1498 = vst.msk [vmem:[#allocation2 + $0x8] sm:$0xf] %vm348_vm0, %v1493_v44  ;;  %vm352_vm0 = vcmask 132096  }
 0x17a   : > { %1497 = vst.msk [vmem:[#allocation2] sm:$0xff] %vm3196_vm5, %v1494_v45  ;;  %vm354_vm5 = vcmask 271496  }
 0x17b   : > { %353 = vst.msk [vmem:[#allocation4] sm:$0x3] %vm352_vm0, %v2992_v1  ;;  %356 = vst.msk [vmem:[#allocation6] sm:$0x3] %vm352_vm0, %v2992_v1  ;;  %vm674_vm0 = vcmask 1041544  }
 0x17c   : > { %355 = vst.msk [vmem:[#allocation4 + $0x4] sm:$0x3] %vm354_vm5, %v2992_v1  ;;  %357 = vst.msk [vmem:[#allocation6 + $0x4] sm:$0x3] %vm354_vm5, %v2992_v1  ;;  %vm675_vm5 = vcmask 1043458  }
 0x17d   : > { %vm676_vm2 = vmor %vm675_vm5, %vm674_vm0 }
 0x17e   : > { %vm3391_vm9 = vmor %vm677_vm3, %vm676_vm2  ;;  %vm4020_vm2 = vcmask 777216   ;;  %vm4021_vm3 = vcmask 769024  }
 0x17f   : > { %vm4022_vm0 = vmmov %vm4021_vm3 }
 0x180   : > { %v1545_v46 = vld [vmem:[#allocation2 + $0x8] sm:$0xf]  ;;  %vm4023_vm5 = vmmov %vm4020_vm2 }
 0x181   : > { %1553 = vrot.lane.b32.xlu1 %v1545_v46, %s2995_s15  ;;  %v3326_v47 = vld [vmem:[#allocation2] sm:$0xff]  ;;  %v1526_v48 = vld [vmem:[#allocation2 + $0x8] sm:$0xf] }
 0x182   : > { %1549 = vrot.lane.b32.xlu0 %v3326_v47, %s2995_s15  ;;  %v3332_v49 = vcombine.high %v3326_v47, %v3326_v47  ;;  %v2825_v50 = vld [vmem:[#allocation2 + $0x8] ss:$0 sps:$4 sm:$0xff]   ;;  %v3340_v6 = vcombine.low %v3326_v47, %v3326_v47  ;;  %v1503_v55 = vsel %vm3211_vm6, %v3326_v47, 0.0 }
 0x183   : > { %v1587_v51 = vld [vmem:[#allocation2 + $0x8] sm:$0xf]  ;;  %1505 = vst [vmem:[#allocation3] sm:$0xf] %v1503_v55 }
 0x184   : > { %v1570_v54 = vld [vmem:[#allocation2 + $0x8] sm:$0xf]  ;;  %v1504_v56 = vsel %vm3219_vm7, %v3332_v49, 0.0 }
 0x185   : > { %1534 = vrot.lane.b32.xlu1 %v1526_v48, %s2997_s12  ;;  %1506 = vst [vmem:[#allocation3 + $0x8] sm:$0xf] %v1504_v56  ;;  %v1612_v18 = vld [vmem:[#allocation2 + $0x8] sm:$0xf] }
 0x186   : > { %1551 = vrot.lane.b32.xlu0 %v3332_v49, %s2995_s15 }
 0x189   : > { %1517 = vrot.lane.b32.xlu1 %v2825_v50, %s2999_s22 }
 0x18d   : > { %1513 = vrot.lane.b32.xlu1 %v3340_v6, %s2999_s22 }
 0x191   : > { %1595 = vrot.lane.b32.xlu1 %v1587_v51, %s2998_s11 }
 0x195   : > { %1618 = vrot.lane.b32.xlu1 %v3332_v49, %s2994_s17 }
 0x199   : > { %1578 = vrot.lane.b32.xlu1 %v1570_v54, %s2996_s14 }
 0x19d   : > { %1638 = vrot.lane.b32.xlu1 %v3326_v47, %s3000_s19 }
 0x1f3   : > { %v1554_v58 = vpop.permute.xlu1 %1553 }
 0x1f4   : > { %v1550_v57 = vpop.permute.xlu0 %1549 }
 0x1f7   : > { %v1535_v19 = vpop.permute.xlu1 %1534 }
 0x1f8   : > { %v1552_v59 = vpop.permute.xlu0 %1551 }
 0x1f9   : > { %v1555_v60 = vsel %vm444_vm10, %v1550_v57, %v1552_v59  ;;  %v1556_v61 = vsel %vm444_vm10, %v1552_v59, %v1554_v58 }
 0x1fa   : > { %v1559_v62 = vsel %vm3211_vm6, %v1555_v60, 0.0  ;;  %v1560_v63 = vsel %vm3219_vm7, %v1556_v61, 0.0 }
 0x1fb   : > { %v1563_v0 = vrot.slane %v1559_v62, 4  ;;  %v1564_v2 = vrot.slane %v1560_v63, 4  ;;  %v1518_v23 = vpop.permute.xlu1 %1517 }
 0x1fd   : > { %1567 = vst [vmem:[#allocation3 + $0x10] sm:$0xf0] %v1563_v0  ;;  %1568 = vst [vmem:[#allocation3 + $0x18] sm:$0xf0] %v1564_v2 }
 0x1ff   : > { %v1514_v28 = vpop.permute.xlu1 %1513 }
 0x203   : > { %v1596_v44 = vpop.permute.xlu1 %1595 }
 0x207   : > { %v1619_v5 = vpop.permute.xlu1 %1618 }
 0x241   : > { %v654_v9 = vpop.f32.mrb[0].mxu0 }
 0x242   : > { %v655_v10 = vadd.f32 %v654_v9, %v3319_v42  ;;  %v656_v11 = vpop.f32.mrb[1].mxu0 }
 0x243   : > { %v657_v13 = vadd.f32 %v656_v11, %v3319_v42 }
 0x245   : > { %v661_v15 = vcombine.low %v655_v10, %v657_v13 }
 0x247   : > { %v668_v17 = vrot.slane %v661_v15, %v3371_v12 }
 0x249   : > { %669 = vrot.lane.b32.xlu0 %v668_v17, %s2993_s26 }
 0x24d   : > { %1532 = vrot.lane.b32.xlu0 %v3332_v49, %s2997_s12 }
 0x251   : > { %1515 = vrot.lane.b32.xlu0 %v3326_v47, %s2999_s22 }
 0x255   : > { %1530 = vrot.lane.b32.xlu0 %v3326_v47, %s2997_s12 }
 0x259   : > { %1593 = vrot.lane.b32.xlu0 %v3332_v49, %s2998_s11 }
 0x25d   : > { %1591 = vrot.lane.b32.xlu0 %v3326_v47, %s2998_s11 }
 0x261   : > { %1620 = vrot.lane.b32.xlu0 %v1612_v18, %s2994_s17 }
 0x265   : > { %1576 = vrot.lane.b32.xlu0 %v3332_v49, %s2996_s14 }
 0x269   : > { %1616 = vrot.lane.b32.xlu0 %v3326_v47, %s2994_s17 }
 0x2bb   : > { %v670_v20 = vpop.permute.xlu0 %669 }
 0x2bc   : > { %v671_v22 = vrot.slane %v670_v20, 6 }
 0x2be   : > { %v672_v24 = vsel %vm369_vm4, %v671_v22, %v670_v20 }
 0x2bf   : > { %679 = vst.msk [vmem:[#allocation4] sm:$0x3f] %vm3391_vm9, %v672_v24  ;;  %v1533_v25 = vpop.permute.xlu0 %1532  ;;  %v1579_v24 = vpop.permute.xlu1 %1578 }
 0x2c0   : > { %v1537_v26 = vsel %vm424_vm11, %v1533_v25, %v1535_v19 }
 0x2c1   : > { %v1541_v27 = vsel %vm3275_vm13, %v1537_v26, 0.0 }
 0x2c2   : > { %1543 = vst [vmem:[#allocation3 + $0x18] sm:$0xf] %v1541_v27 }
 0x2c3   : > { %v1516_v29 = vpop.permute.xlu0 %1515 }
 0x2c4   : > { %v1519_v30 = vsel %vm402_vm8, %v1514_v28, %v1516_v29  ;;  %v1520_v31 = vsel %vm402_vm8, %v1516_v29, %v1518_v23 }
 0x2c5   : > { %1523 = vst [vmem:[#allocation3] sm:$0xf0] %v1519_v30  ;;  %1524 = vst [vmem:[#allocation3 + $0x8] sm:$0xf0] %v1520_v31 }
 0x2c6   : > { %v3403_v32 = vld [vmem:[#allocation4] sm:$0x3f] }
 0x2c7   : > { %v1531_v33 = vpop.permute.xlu0 %1530  ;;  %v3407_v34 = vrot.slane %v3403_v32, %v3371_v12  ;;  %v726_v35 = vld [vmem:[#allocation4] sm:$0x3f]  ;;  %v766_v27 = vcombine.high %v3403_v32, %v3403_v32 }
 0x2c8   : > { %v2671_v36 = vld.sshfl [vmem:[#allocation4] sm:$0x33 pattern:$0x76325410]  ;;  %v1536_v37 = vsel %vm424_vm11, %v1531_v33, %v1533_v25  ;;  %v735_v38 = vrot.slane %v726_v35, %v3371_v12  ;;  %v728_v19 = vcombine.high %v726_v35, %v726_v35 }
 0x2c9   : > { %v3411_v40 = vld [vmem:[#allocation4] sm:$0x3f]  ;;  %v1540_v41 = vsel %vm3269_vm12, %v1536_v37, 0.0  ;;  %782 = vrot.lane.b32.xlu1 %v3407_v34, %s2995_s15  ;;  %v1670_v54 = vld [vmem:[#allocation3 + $0x18] sm:$0xff]  ;;  %v689_v56 = vcombine.high %v2671_v36, %v2671_v36  ;;  %v692_v11 = vsel %vm3211_vm6, %v2671_v36, 0.0  ;;  %v781_v29 = vcombine.high %v3407_v34, %v3407_v34 }
 0x2ca   : > { %v3417_v43 = vld [vmem:[#allocation4] sm:$0x3f]  ;;  %1542 = vst [vmem:[#allocation3 + $0x10] sm:$0xf] %v1540_v41  ;;  %744 = vrot.lane.b32.xlu0 %v735_v38, %s2997_s12  ;;  %v3422_v46 = vrot.slane %v3411_v40, %v3371_v12  ;;  %694 = vst [vmem:[#allocation5] sm:$0x3] %v692_v11  ;;  %v743_v22 = vcombine.high %v735_v38, %v735_v38  ;;  %v742_v26 = vrot.slane %v728_v19, %v3371_v12 }
 0x2cb   : > { %v1594_v45 = vpop.permute.xlu0 %1593  ;;  %v841_v50 = vrot.slane %v3417_v43, %v3371_v12  ;;  %v3427_v55 = vld [vmem:[#allocation4] sm:$0x3f]  ;;  %v693_v4 = vsel %vm3219_vm7, %v689_v56, 0.0  ;;  %v780_v31 = vrot.slane %v766_v27, %v3371_v12  ;;  %v834_v33 = vcombine.high %v3417_v43, %v3417_v43 }
 0x2cc   : > { %v1598_v48 = vsel %vm3997_vm14, %v1594_v45, %v1596_v44  ;;  %v1668_v51 = vld [vmem:[#allocation3 + $0x8] sm:$0xff]  ;;  %v3433_v59 = vld [vmem:[#allocation4] sm:$0x3f]  ;;  %v712_v62 = vrot.slane %v3427_v55, %v3371_v12  ;;  %v1667_v9 = vld [vmem:[#allocation3] sm:$0xff]  ;;  %695 = vst [vmem:[#allocation5 + $0x8] sm:$0x3] %v693_v4  ;;  %v872_v37 = vcombine.high %v3411_v40, %v3411_v40  ;;  %v887_v38 = vcombine.high %v3422_v46, %v3422_v46 }
 0x2cd   : > { %v1602_v57 = vsel %vm3275_vm13, %v1598_v48, 0.0  ;;  %888 = vrot.lane.b32.xlu1 %v3422_v46, %s2994_s17  ;;  %v2712_v58 = vpack.c.bf16 %v1670_v54, %v1668_v51  ;;  %v811_v0 = vrot.slane %v3433_v59, %v3371_v12  ;;  %v3441_v2 = vld [vmem:[#allocation4] sm:$0x3f]  ;;  %v849_v32 = vcombine.high %v841_v50, %v841_v50 }
 0x2ce   : > { %v1606_v60 = vrot.slane %v1602_v57, 4  ;;  %850 = vrot.lane.b32.xlu0 %v841_v50, %s2998_s11  ;;  %v948_v18 = vrot.slane %v3441_v2, %v3371_v12  ;;  %v848_v34 = vrot.slane %v834_v33, %v3371_v12  ;;  %v908_v41 = vld [vmem:[#allocation4] sm:$0x3f]  ;;  %v886_v43 = vrot.slane %v872_v37, %v3371_v12 }
 0x2cf   : > { %2713 = vmatprep.subr.bf16.mxu0 %v2712_v58  ;;  %v1592_v61 = vpop.permute.xlu0 %1591  ;;  %v804_v44 = vcombine.high %v3433_v59, %v3433_v59  ;;  %v910_v48 = vcombine.low %v908_v41, %v908_v41  ;;  %v924_v46 = vrot.slane %v908_v41, %v3371_v12  ;;  %v941_v51 = vcombine.high %v3441_v2, %v3441_v2 }
 0x2d0   : > { %1610 = vst [vmem:[#allocation3 + $0x28] sm:$0xf0] %v1606_v60  ;;  %v1597_v63 = vsel %vm3997_vm14, %v1592_v61, %v1594_v45  ;;  %v819_v45 = vcombine.high %v811_v0, %v811_v0  ;;  %v698_v54 = vcombine.low %v3427_v55, %v3427_v55  ;;  %v956_v60 = vcombine.high %v948_v18, %v948_v18  ;;  %v2836_v55 = vld [vmem:[#allocation2 + $0x8] ss:$0 sps:$4 sm:$0xff]  }
 0x2d1   : > { %v1601_v7 = vsel %vm3269_vm12, %v1597_v63, 0.0  ;;  %718 = vrot.lane.b32.xlu1 %v712_v62, %s2999_s22  ;;  %v1669_v10 = vld [vmem:[#allocation3 + $0x10] sm:$0xff]  ;;  %v818_v40 = vrot.slane %v804_v44, %v3371_v12  ;;  %v917_v50 = vrot.slane %v910_v48, %v3371_v12  ;;  %v926_v56 = vcombine.low %v924_v46, %v924_v46  ;;  %v1649_v62 = vld [vmem:[#allocation2 + $0x8] sm:$0xf]  ;;  %v3516_v63 = vpop.permute.xlu1 %1638 }
 0x2d2   : > { %v1605_v13 = vrot.slane %v1601_v7, 4  ;;  %820 = vrot.lane.b32.xlu0 %v811_v0, %s2996_s14  ;;  %v2714_v15 = vpack.c.bf16 %v1669_v10, %v1667_v9  ;;  %v955_v57 = vrot.slane %v941_v51, %v3371_v12  ;;  %v705_v58 = vrot.slane %v698_v54, %v3371_v12 }
 0x2d3   : > { %v1621_v17 = vpop.permute.xlu0 %1620  ;;  %v925_v61 = vcombine.low %v917_v50, %v917_v50 }
 0x2d4   : > { %1609 = vst [vmem:[#allocation3 + $0x20] sm:$0xf0] %v1605_v13  ;;  %v1623_v20 = vsel %vm3996_vm15, %v1619_v5, %v1621_v17  ;;  %2715 = vmatpush1.bf16.msra.mxu0 %v2714_v15  ;;  %v713_v59 = vcombine.high %v705_v58, %v705_v58 }
 0x2d5   : > { %v1627_v23 = vsel %vm3219_vm7, %v1623_v20, 0.0  ;;  %957 = vrot.lane.b32.xlu1 %v948_v18, %s3001_s20 }
 0x2d6   : > { %1629 = vst [vmem:[#allocation3 + $0x38] sm:$0xf] %v1627_v23  ;;  %746 = vrot.lane.b32.xlu0 %v743_v22, %s2997_s12 }
 0x2d7   : > { %v3458_v25 = vpop.permute.xlu0 %1576 }
 0x2d8   : > { %v1581_v28 = vsel %vm3995_vm1, %v3458_v25, %v1579_v24 }
 0x2d9   : > { %1585 = vst [vmem:[#allocation3 + $0x28] sm:$0xf] %v1581_v28  ;;  %748 = vrot.lane.b32.xlu1 %v742_v26, %s2997_s12 }
 0x2da   : > { %784 = vrot.lane.b32.xlu0 %v781_v29, %s2995_s15 }
 0x2db   : > { %v1617_v30 = vpop.permute.xlu0 %1616 }
 0x2dc   : > { %v1622_v35 = vsel %vm3996_vm15, %v1617_v30, %v1619_v5 }
 0x2dd   : > { %v1626_v36 = vsel %vm3211_vm6, %v1622_v35, 0.0  ;;  %786 = vrot.lane.b32.xlu1 %v780_v31, %s2995_s15 }
 0x2de   : > { %1628 = vst [vmem:[#allocation3 + $0x30] sm:$0xf] %v1626_v36  ;;  %852 = vrot.lane.b32.xlu0 %v849_v32, %s2998_s11 }
 0x2e1   : > { %854 = vrot.lane.b32.xlu1 %v848_v34, %s2998_s11 }
 0x2e2   : > { %890 = vrot.lane.b32.xlu0 %v887_v38, %s2994_s17 }
 0x2e5   : > { %892 = vrot.lane.b32.xlu1 %v886_v43, %s2994_s17 }
 0x2e6   : > { %822 = vrot.lane.b32.xlu0 %v819_v45, %s2996_s14 }
 0x2e9   : > { %824 = vrot.lane.b32.xlu1 %v818_v40, %s2996_s14 }
 0x2ea   : > { %929 = vrot.lane.b32.xlu0 %v917_v50, %s3000_s19 }
 0x2ed   : > { %931 = vrot.lane.b32.xlu1 %v926_v56, %s3000_s19 }
 0x2ee   : > { %961 = vrot.lane.b32.xlu0 %v955_v57, %s3001_s20 }
 0x2f1   : > { %714 = vrot.lane.b32.xlu1 %v705_v58, %s2999_s22 }
 0x2f2   : > { %716 = vrot.lane.b32.xlu0 %v713_v59, %s2999_s22 }
 0x2f5   : > { %959 = vrot.lane.b32.xlu1 %v956_v60, %s3001_s20 }
 0x2f6   : > { %1640 = vrot.lane.b32.xlu0 %v2836_v55, %s3000_s19 }
 0x2f9   : > { %927 = vrot.lane.b32.xlu1 %v925_v61, %s3000_s19 }
 0x2fa   : > { %1636 = vrot.lane.b32.xlu0 %v3340_v6, %s3000_s19 }
 0x2fd   : > { %1574 = vrot.lane.b32.xlu1 %v3326_v47, %s2996_s14 }
 0x2fe   : > { %1657 = vrot.lane.b32.xlu0 %v1649_v62, %s3001_s20 }
 0x301   : > { %1655 = vrot.lane.b32.xlu1 %v3332_v49, %s3001_s20 }
 0x305   : > { %1653 = vrot.lane.b32.xlu1 %v3326_v47, %s3001_s20 }
 0x33b   : > { %v783_v0 = vpop.permute.xlu1 %782 }
 0x33c   : > { %v745_v2 = vpop.permute.xlu0 %744 }
 0x33f   : > { %v889_v4 = vpop.permute.xlu1 %888 }
 0x340   : > { %v851_v5 = vpop.permute.xlu0 %850 }
 0x343   : > { %v719_v7 = vpop.permute.xlu1 %718 }
 0x344   : > { %v821_v6 = vpop.permute.xlu0 %820 }
 0x347   : > { %v958_v9 = vpop.permute.xlu1 %957 }
 0x348   : > { %v747_v10 = vpop.permute.xlu0 %746 }
 0x349   : > { %v750_v11 = vsel %vm424_vm11, %v745_v2, %v747_v10 }
 0x34a   : > { %v754_v13 = vsel %vm3269_vm12, %v750_v11, 0.0 }
 0x34b   : > { %v758_v15 = vrot.slane %v754_v13, 4  ;;  %v749_v49 = vpop.permute.xlu1 %748 }
 0x34c   : > { %v751_v17 = vsel %vm424_vm11, %v747_v10, %v749_v49  ;;  %v785_v47 = vpop.permute.xlu0 %784 }
 0x34d   : > { %762 = vst [vmem:[#allocation5] sm:$0x30] %v758_v15  ;;  %v755_v18 = vsel %vm3275_vm13, %v751_v17, 0.0  ;;  %v788_v19 = vsel %vm444_vm10, %v783_v0, %v785_v47 }
 0x34e   : > { %v759_v20 = vrot.slane %v755_v18, 4  ;;  %v792_v22 = vsel %vm3211_vm6, %v788_v19, 0.0 }
 0x34f   : > { %v796_v23 = vrot.slane %v792_v22, 2  ;;  %v787_v24 = vpop.permute.xlu1 %786 }
 0x350   : > { %763 = vst [vmem:[#allocation5 + $0x8] sm:$0x30] %v759_v20  ;;  %v789_v26 = vsel %vm444_vm10, %v785_v47, %v787_v24  ;;  %v853_v27 = vpop.permute.xlu0 %852  ;;  %v1672_v20 = vld [vmem:[#allocation3 + $0x28] sm:$0xff] }
 0x351   : > { %800 = vst [vmem:[#allocation5] sm:$0xc0] %v796_v23  ;;  %v793_v28 = vsel %vm3219_vm7, %v789_v26, 0.0  ;;  %v856_v29 = vsel %vm3997_vm14, %v851_v5, %v853_v27 }
 0x352   : > { %v797_v30 = vrot.slane %v793_v28, 2  ;;  %v860_v31 = vsel %vm3269_vm12, %v856_v29, 0.0 }
 0x353   : > { %v864_v33 = vrot.slane %v860_v31, 6  ;;  %v855_v35 = vpop.permute.xlu1 %854 }
 0x354   : > { %801 = vst [vmem:[#allocation5 + $0x8] sm:$0xc0] %v797_v30  ;;  %v857_v32 = vsel %vm3997_vm14, %v853_v27, %v855_v35  ;;  %v891_v36 = vpop.permute.xlu0 %890 }
 0x355   : > { %868 = vst [vmem:[#allocation5 + $0x10] sm:$0xc] %v864_v33  ;;  %v861_v34 = vsel %vm3275_vm13, %v857_v32, 0.0  ;;  %v894_v37 = vsel %vm3996_vm15, %v889_v4, %v891_v36 }
 0x356   : > { %v865_v38 = vrot.slane %v861_v34, 6  ;;  %v898_v41 = vsel %vm3211_vm6, %v894_v37, 0.0  ;;  %v3570_v37 = vld [vmem:[%s3982_s3] sm:$0x3] }
 0x357   : > { %v902_v43 = vrot.slane %v898_v41, 4  ;;  %v893_v44 = vpop.permute.xlu1 %892 }
 0x358   : > { %869 = vst [vmem:[#allocation5 + $0x18] sm:$0xc] %v865_v38  ;;  %v895_v45 = vsel %vm3996_vm15, %v891_v36, %v893_v44  ;;  %v823_v48 = vpop.permute.xlu0 %822  ;;  %v362_v44 = vld [vmem:[%s3983_s4] sm:$0x3] }
 0x359   : > { %906 = vst [vmem:[#allocation5 + $0x10] sm:$0x30] %v902_v43  ;;  %v899_v40 = vsel %vm3219_vm7, %v895_v45, 0.0  ;;  %v826_v46 = vsel %vm3995_vm1, %v821_v6, %v823_v48  ;;  %979 = vperm.xlu0 %2820, %v362_v44  }
 0x35a   : > { %v903_v50 = vrot.slane %v899_v40, 4  ;;  %830 = vst [vmem:[#allocation5 + $0x10] sm:$0x3] %v826_v46 }
 0x35b   : > { %v825_v51 = vpop.permute.xlu1 %824 }
 0x35c   : > { %907 = vst [vmem:[#allocation5 + $0x18] sm:$0x30] %v903_v50  ;;  %v827_v54 = vsel %vm3995_vm1, %v823_v48, %v825_v51  ;;  %v930_v56 = vpop.permute.xlu0 %929 }
 0x35d   : > { %831 = vst [vmem:[#allocation5 + $0x18] sm:$0x3] %v827_v54 }
 0x35f   : > { %v932_v57 = vpop.permute.xlu1 %931 }
 0x360   : > { %v934_v58 = vsel %vm4020_vm2, %v930_v56, %v932_v57  ;;  %v962_v59 = vpop.permute.xlu0 %961 }
 0x361   : > { %938 = vst [vmem:[#allocation5 + $0x18] sm:$0xc0] %v934_v58 }
 0x363   : > { %v715_v60 = vpop.permute.xlu1 %714 }
 0x364   : > { %v717_v55 = vpop.permute.xlu0 %716 }
 0x365   : > { %v720_v61 = vsel %vm402_vm8, %v715_v60, %v717_v55  ;;  %v721_v62 = vsel %vm402_vm8, %v717_v55, %v719_v7 }
 0x366   : > { %724 = vst [vmem:[#allocation5] sm:$0xc] %v720_v61  ;;  %725 = vst [vmem:[#allocation5 + $0x8] sm:$0xc] %v721_v62 }
 0x367   : > { %v960_v0 = vpop.permute.xlu1 %959 }
 0x368   : > { %v963_v2 = vsel %vm4021_vm3, %v958_v9, %v960_v0  ;;  %v964_v4 = vsel %vm4022_vm0, %v960_v0, %v962_v59  ;;  %v1641_v5 = vpop.permute.xlu0 %1640  ;;  %vm4024_vm3 = vmmov %vm4020_vm2  ;;  %v974_v17 = vld [vmem:[#allocation5 + $0x18] sm:$0xff] }
 0x369   : > { %v967_v6 = vsel %vm3269_vm12, %v963_v2, 0.0  ;;  %v968_v10 = vsel %vm3275_vm13, %v964_v4, 0.0  ;;  %v1643_v11 = vsel %vm4023_vm5, %v3516_v63, %v1641_v5  ;;  %vm986_vm5 = vcmask 1041408  }
 0x36a   : > { %969 = vst [vmem:[#allocation5 + $0x20] sm:$0x3] %v967_v6  ;;  %970 = vst [vmem:[#allocation5 + $0x28] sm:$0x3] %v968_v10 }
 0x36b   : > { %1647 = vst [vmem:[#allocation3 + $0x38] sm:$0xf0] %v1643_v11  ;;  %v928_v7 = vpop.permute.xlu1 %927 }
 0x36c   : > { %v933_v13 = vsel %vm4020_vm2, %v928_v7, %v930_v56  ;;  %v1637_v15 = vpop.permute.xlu0 %1636  ;;  %vm4025_vm2 = vmmov %vm4022_vm0 }
 0x36d   : > { %937 = vst [vmem:[#allocation5 + $0x10] sm:$0xc0] %v933_v13  ;;  %v1642_v9 = vsel %vm4024_vm3, %v1637_v15, %v3516_v63  ;;  %v972_v49 = vld [vmem:[#allocation5 + $0x8] sm:$0xff]  ;;  %v971_v28 = vld [vmem:[#allocation5] sm:$0xff]  ;;  %vm982_vm3 = vcmask 146432  }
 0x36e   : > { %1646 = vst [vmem:[#allocation3 + $0x30] sm:$0xf0] %v1642_v9  ;;  %v2704_v47 = vpack.c.bf16 %v974_v17, %v972_v49 }
 0x36f   : > { %v1575_v18 = vpop.permute.xlu1 %1574 }
 0x370   : > { %v1580_v19 = vsel %vm3995_vm1, %v1575_v18, %v3458_v25  ;;  %2705 = vmatprep.subr.bf16.mxu1 %v2704_v47  ;;  %v1658_v24 = vpop.permute.xlu0 %1657  ;;  %vm4028_vm1 = vcmask 293888  }
 0x371   : > { %1584 = vst [vmem:[#allocation3 + $0x20] sm:$0xf] %v1580_v19  ;;  %v976_v25 = vld [vmem:[#allocation5 + $0x28] sm:$0x3]  ;;  %v975_v38 = vld [vmem:[#allocation5 + $0x20] sm:$0x3] }
 0x372   : > { %v1674_v22 = vld [vmem:[#allocation3 + $0x38] sm:$0xff] }
 0x373   : > { %v2716_v23 = vpack.c.bf16 %v1674_v22, %v1672_v20  ;;  %v1656_v26 = vpop.permute.xlu1 %1655 }
 0x374   : > { %v1660_v27 = vsel %vm4022_vm0, %v1656_v26, %v1658_v24  ;;  %v973_v63 = vld [vmem:[#allocation5 + $0x10] sm:$0xff]  ;;  %vm4026_vm0 = vcmask 1043456  }
 0x375   : > { %2717 = vmatprep.subr.bf16.mxu0 %v2716_v23  ;;  %v1664_v29 = vsel %vm3275_vm13, %v1660_v27, 0.0  ;;  %v2706_v30 = vpack.c.bf16 %v973_v63, %v971_v28  ;;  %v1673_v32 = vld [vmem:[#allocation3 + $0x30] sm:$0xff] }
 0x376   : > { %1666 = vst [vmem:[#allocation3 + $0x48] sm:$0xf] %v1664_v29 }
 0x377   : > { %v1654_v31 = vpop.permute.xlu1 %1653  ;;  %2707 = vmatpush1.bf16.msra.mxu1 %v2706_v30 }
 0x378   : > { %v1659_v33 = vsel %vm4025_vm2, %v1654_v31, %v1656_v26  ;;  %2672 = vmatprep.subr.msk.mxu1 %vm986_vm5, %v976_v25  ;;  %v1671_v35 = vld [vmem:[#allocation3 + $0x20] sm:$0xff]  ;;  %vm4027_vm2 = vmmov %vm4026_vm0 }
 0x379   : > { %v1663_v36 = vsel %vm3269_vm12, %v1659_v33, 0.0  ;;  %v2718_v34 = vpack.c.bf16 %v1673_v32, %v1671_v35 }
 0x37a   : > { %1665 = vst [vmem:[#allocation3 + $0x40] sm:$0xf] %v1663_v36 }
 0x37b   : > { %2673 = vmatpush1.msk.msra.mxu1 %vm986_vm5, %v975_v38  ;;  %2719 = vmatpush1.bf16.msra.mxu0 %v2718_v34 }
 0x37c   : > { %2674 = vmatmul.mubr.msk.f32.vlgmr.msra.gmra.mrb[0].mxu1 %vm982_vm3, %v3570_v37 }
 0x37d   : > { %v1676_v41 = vld [vmem:[#allocation3 + $0x48] sm:$0xf]  ;;  %1459 = vmatprep.mubr.f32.mxu1 %v2992_v1 }
 0x37e   : > { %2679 = vmatprep.subr.msk.mxu0 %vm4026_vm0, %v1676_v41  ;;  %vm4030_vm0 = vcmask 777216  }
 0x381   : > { %v1675_v43 = vld [vmem:[#allocation3 + $0x40] sm:$0xf] }
 0x382   : > { %2680 = vmatpush1.msk.msra.mxu0 %vm4027_vm2, %v1675_v43 }
 0x383   : > { %2681 = vmatmul.mubr.msk.f32.vlgmr.msra.gmra.mrb[2].mxu0 %vm4028_vm1, %v3312_v39  ;;  %vm4029_vm1 = vcmask 908288  }
 0x384   : > { %vm4031_vm2 = vmmov %vm4029_vm1 }
 0x3d8   : > { %v3587_v57 = vpop.permute.xlu0 %979 }
 0x44f   : > { %v1059_v45 = vpop.f32.mrb[0].mxu1 }
 0x450   : > { %v1061_v48 = vpop.f32.mrb[1].mxu1  ;;  %v1060_v39 = vadd.f32 %v1059_v45, %v3587_v57 }
 0x451   : > { %v1062_v58 = vadd.f32 %v1061_v48, %v3587_v57 }
 0x453   : > { %v1066_v59 = vcombine.low %v1060_v39, %v1062_v58 }
 0x455   : > { %v1073_v18 = vrot.slane %v1066_v59, %v3371_v12 }
 0x456   : > { %v1749_v40 = vpop.f32.mrb[2].mxu0 }
 0x457   : > { %v1750_v46 = vadd.f32 %v1749_v40, %v3319_v42  ;;  %v1751_v50 = vpop.f32.mrb[3].mxu0 }
 0x458   : > { %v1752_v51 = vadd.f32 %v1751_v50, %v3319_v42 }
 0x45a   : > { %v1756_v54 = vcombine.low %v1750_v46, %v1752_v51 }
 0x45c   : > { %v1763_v56 = vrot.slane %v1756_v54, %v3371_v12 }
 0x45e   : > { %1764 = vrot.lane.b32.xlu1 %v1763_v56, %s2993_s26 }
 0x4d0   : > { %v1765_v60 = vpop.permute.xlu1 %1764 }
 0x4d1   : > { %v1766_v55 = vrot.slane %v1765_v60, 6 }
 0x4d3   : > { %v1767_v61 = vsel %vm369_vm4, %v1766_v55, %v1765_v60 }
 0x4d4   : > { %1769 = vst.msk [vmem:[#allocation4] sm:$0x3f] %vm3391_vm9, %v1767_v61 }
 0x4db   : > { %v1816_v42 = vld [vmem:[#allocation4] sm:$0x3f] }
 0x4dc   : > { %v1854_v62 = vld [vmem:[#allocation4] sm:$0x3f]  ;;  %v1825_v0 = vrot.slane %v1816_v42, %v3371_v12  ;;  %v1818_v2 = vcombine.high %v1816_v42, %v1816_v42 }
 0x4dd   : > { %v1863_v6 = vrot.slane %v1854_v62, %v3371_v12  ;;  %v1856_v10 = vcombine.high %v1854_v62, %v1854_v62  ;;  %v2682_v11 = vld.sshfl [vmem:[#allocation4] sm:$0x33 pattern:$0x76325410] }
 0x4de   : > { %v1833_v4 = vcombine.high %v1825_v0, %v1825_v0  ;;  %v1832_v5 = vrot.slane %v1818_v2, %v3371_v12  ;;  %v1922_v7 = vld [vmem:[#allocation4] sm:$0x3f]  ;;  %v1782_v13 = vsel %vm3211_vm6, %v2682_v11, 0.0  ;;  %v1779_v17 = vcombine.high %v2682_v11, %v2682_v11 }
 0x4df   : > { %1784 = vst [vmem:[#allocation5] sm:$0x3] %v1782_v13  ;;  %v1871_v15 = vcombine.high %v1863_v6, %v1863_v6  ;;  %v1870_v9 = vrot.slane %v1856_v10, %v3371_v12  ;;  %v1924_v49 = vcombine.high %v1922_v7, %v1922_v7  ;;  %v1960_v47 = vld [vmem:[#allocation4] sm:$0x3f]  ;;  %v1931_v23 = vrot.slane %v1922_v7, %v3371_v12 }
 0x4e0   : > { %1836 = vrot.lane.b32.xlu1 %v1833_v4, %s2997_s12  ;;  %1838 = vrot.lane.b32.xlu0 %v1832_v5, %s2997_s12  ;;  %v1783_v19 = vsel %vm3219_vm7, %v1779_v17, 0.0  ;;  %v1962_v22 = vcombine.high %v1960_v47, %v1960_v47  ;;  %v1969_v27 = vrot.slane %v1960_v47, %v3371_v12  ;;  %v1786_v28 = vld [vmem:[#allocation4] sm:$0x3f] }
 0x4e1   : > { %1785 = vst [vmem:[#allocation5 + $0x8] sm:$0x3] %v1783_v19  ;;  %v1938_v20 = vrot.slane %v1924_v49, %v3371_v12  ;;  %v1939_v26 = vcombine.high %v1931_v23, %v1931_v23  ;;  %v1788_v29 = vcombine.low %v1786_v28, %v1786_v28  ;;  %v1892_v31 = vld [vmem:[#allocation4] sm:$0x3f]  ;;  %v1802_v36 = vrot.slane %v1786_v28, %v3371_v12 }
 0x4e2   : > { %v1976_v24 = vrot.slane %v1962_v22, %v3371_v12  ;;  %v1977_v63 = vcombine.high %v1969_v27, %v1969_v27  ;;  %v3625_v33 = vrot.slane %v1892_v31, %v3371_v12  ;;  %v1998_v35 = vld [vmem:[#allocation4] sm:$0x3f]  ;;  %v1894_v38 = vcombine.high %v1892_v31, %v1892_v31 }
 0x4e3   : > { %v3618_v30 = vrot.slane %v1788_v29, %v3371_v12  ;;  %v2000_v34 = vcombine.low %v1998_v35, %v1998_v35  ;;  %v2014_v44 = vrot.slane %v1998_v35, %v3371_v12 }
 0x4e4   : > { %1874 = vrot.lane.b32.xlu1 %v1871_v15, %s2995_s15  ;;  %1876 = vrot.lane.b32.xlu0 %v1870_v9, %s2995_s15  ;;  %v1909_v32 = vcombine.high %v3625_v33, %v3625_v33  ;;  %v1908_v43 = vrot.slane %v1894_v38, %v3371_v12 }
 0x4e5   : > { %v1803_v25 = vcombine.high %v3618_v30, %v3618_v30  ;;  %v3635_v41 = vrot.slane %v2000_v34, %v3371_v12  ;;  %v2016_v45 = vcombine.low %v2014_v44, %v2014_v44 }
 0x4e8   : > { %1944 = vrot.lane.b32.xlu0 %v1938_v20, %s2998_s11  ;;  %1074 = vrot.lane.b32.xlu1 %v1073_v18, %s2993_s26 }
 0x4ec   : > { %1982 = vrot.lane.b32.xlu0 %v1976_v24, %s2994_s17  ;;  %1942 = vrot.lane.b32.xlu1 %v1939_v26, %s2998_s11 }
 0x4f0   : > { %1872 = vrot.lane.b32.xlu0 %v1863_v6, %s2995_s15  ;;  %1980 = vrot.lane.b32.xlu1 %v1977_v63, %s2994_s17 }
 0x4f4   : > { %1978 = vrot.lane.b32.xlu0 %v1969_v27, %s2994_s17  ;;  %1834 = vrot.lane.b32.xlu1 %v1825_v0, %s2997_s12 }
 0x4f8   : > { %1806 = vrot.lane.b32.xlu0 %v1803_v25, %s2999_s22  ;;  %1940 = vrot.lane.b32.xlu1 %v1931_v23, %s2998_s11 }
 0x4fc   : > { %1912 = vrot.lane.b32.xlu0 %v1909_v32, %s2996_s14  ;;  %1808 = vrot.lane.b32.xlu1 %v1802_v36, %s2999_s22 }
 0x500   : > { %2019 = vrot.lane.b32.xlu0 %v3635_v41, %s3000_s19  ;;  %1914 = vrot.lane.b32.xlu1 %v1908_v43, %s2996_s14 }
 0x504   : > { %2021 = vrot.lane.b32.xlu1 %v2016_v45, %s3000_s19 }
 0x552   : > { %v1837_v48 = vpop.permute.xlu1 %1836  ;;  %v1839_v40 = vpop.permute.xlu0 %1838 }
 0x553   : > { %v1841_v46 = vsel %vm424_vm11, %v1837_v48, %v1839_v40 }
 0x554   : > { %v1845_v50 = vsel %vm3275_vm13, %v1841_v46, 0.0 }
 0x555   : > { %v1849_v51 = vrot.slane %v1845_v50, 4 }
 0x556   : > { %v1875_v54 = vpop.permute.xlu1 %1874  ;;  %v1877_v56 = vpop.permute.xlu0 %1876 }
 0x557   : > { %1853 = vst [vmem:[#allocation5 + $0x8] sm:$0x30] %v1849_v51  ;;  %v1879_v39 = vsel %vm444_vm10, %v1875_v54, %v1877_v56 }
 0x558   : > { %v1883_v58 = vsel %vm3219_vm7, %v1879_v39, 0.0 }
 0x559   : > { %v1887_v59 = vrot.slane %v1883_v58, 2 }
 0x55a   : > { %v1075_v60 = vpop.permute.xlu1 %1074  ;;  %v1945_v55 = vpop.permute.xlu0 %1944 }
 0x55b   : > { %1891 = vst [vmem:[#allocation5 + $0x8] sm:$0xc0] %v1887_v59  ;;  %v1076_v61 = vrot.slane %v1075_v60, 6 }
 0x55d   : > { %v1077_v42 = vsel %vm369_vm4, %v1076_v61, %v1075_v60 }
 0x55e   : > { %1079 = vst.msk [vmem:[#allocation6] sm:$0x3f] %vm3391_vm9, %v1077_v42  ;;  %v1943_v62 = vpop.permute.xlu1 %1942  ;;  %v1983_v0 = vpop.permute.xlu0 %1982 }
 0x55f   : > { %v1947_v2 = vsel %vm3997_vm14, %v1943_v62, %v1945_v55 }
 0x560   : > { %v1951_v4 = vsel %vm3275_vm13, %v1947_v2, 0.0 }
 0x561   : > { %v1955_v5 = vrot.slane %v1951_v4, 6 }
 0x562   : > { %v1981_v6 = vpop.permute.xlu1 %1980  ;;  %v1873_v10 = vpop.permute.xlu0 %1872 }
 0x563   : > { %1959 = vst [vmem:[#allocation5 + $0x18] sm:$0xc] %v1955_v5  ;;  %v1985_v11 = vsel %vm3996_vm15, %v1981_v6, %v1983_v0  ;;  %v1878_v7 = vsel %vm444_vm10, %v1873_v10, %v1875_v54 }
 0x564   : > { %v1989_v13 = vsel %vm3219_vm7, %v1985_v11, 0.0  ;;  %v1882_v15 = vsel %vm3211_vm6, %v1878_v7, 0.0 }
 0x565   : > { %v2675_v9 = vld.sshfl [vmem:[#allocation6] sm:$0x33 pattern:$0x76325410]  ;;  %v1993_v49 = vrot.slane %v1989_v13, 4  ;;  %v1886_v17 = vrot.slane %v1882_v15, 2 }
 0x566   : > { %v1092_v47 = vsel %vm3211_vm6, %v2675_v9, 0.0  ;;  %v1835_v18 = vpop.permute.xlu1 %1834  ;;  %v1979_v19 = vpop.permute.xlu0 %1978  ;;  %v3663_v20 = vld [vmem:[#allocation6] sm:$0x3f] }
 0x567   : > { %v1126_v22 = vld [vmem:[#allocation6] sm:$0x3f]  ;;  %1094 = vst [vmem:[#allocation7] sm:$0x3] %v1092_v47  ;;  %1997 = vst [vmem:[#allocation5 + $0x18] sm:$0x30] %v1993_v49  ;;  %v1840_v23 = vsel %vm424_vm11, %v1835_v18, %v1837_v48  ;;  %v1984_v24 = vsel %vm3996_vm15, %v1979_v19, %v1981_v6  ;;  %v1173_v26 = vrot.slane %v3663_v20, %v3371_v12 }
 0x568   : > { %1890 = vst [vmem:[#allocation5] sm:$0xc0] %v1886_v17  ;;  %v1135_v27 = vrot.slane %v1126_v22, %v3371_v12  ;;  %v1844_v28 = vsel %vm3269_vm12, %v1840_v23, 0.0  ;;  %v1988_v63 = vsel %vm3211_vm6, %v1984_v24, 0.0  ;;  %v3674_v29 = vld [vmem:[#allocation6] sm:$0x3f]  ;;  %v1089_v48 = vcombine.high %v2675_v9, %v2675_v9 }
 0x569   : > { %v1232_v31 = vld [vmem:[#allocation6] sm:$0x3f]  ;;  %v1848_v25 = vrot.slane %v1844_v28, 4  ;;  %v1992_v35 = vrot.slane %v1988_v63, 4  ;;  %1182 = vrot.lane.b32.xlu1 %v1173_v26, %s2995_s15  ;;  %v1279_v38 = vrot.slane %v3674_v29, %v3371_v12  ;;  %v1181_v55 = vcombine.high %v1173_v26, %v1173_v26 }
 0x56a   : > { %1144 = vrot.lane.b32.xlu0 %v1135_v27, %s2997_s12  ;;  %v1941_v32 = vpop.permute.xlu1 %1940  ;;  %v3678_v36 = vpop.permute.xlu0 %1806  ;;  %v1241_v43 = vrot.slane %v1232_v31, %v3371_v12  ;;  %v1096_v45 = vld [vmem:[#allocation6] sm:$0x3f]  ;;  %v1143_v50 = vcombine.high %v1135_v27, %v1135_v27  ;;  %v1093_v58 = vsel %vm3219_vm7, %v1089_v48, 0.0  ;;  %v1128_v2 = vcombine.high %v1126_v22, %v1126_v22 }
 0x56b   : > { %1852 = vst [vmem:[#allocation5] sm:$0x30] %v1848_v25  ;;  %1996 = vst [vmem:[#allocation5 + $0x10] sm:$0x30] %v1992_v35  ;;  %v1946_v34 = vsel %vm3997_vm14, %v1941_v32, %v1943_v62  ;;  %v1112_v54 = vrot.slane %v1096_v45, %v3371_v12  ;;  %v1202_v39 = vld [vmem:[#allocation6] sm:$0x3f]  ;;  %v1287_v10 = vcombine.high %v1279_v38, %v1279_v38 }
 0x56c   : > { %v1950_v44 = vsel %vm3269_vm12, %v1946_v34, 0.0  ;;  %1095 = vst [vmem:[#allocation7 + $0x8] sm:$0x3] %v1093_v58  ;;  %v1211_v61 = vrot.slane %v1202_v39, %v3371_v12  ;;  %v1339_v42 = vld [vmem:[#allocation6] sm:$0x3f]  ;;  %v1249_v5 = vcombine.high %v1241_v43, %v1241_v43  ;;  %v1142_v11 = vrot.slane %v1128_v2, %v3371_v12 }
 0x56d   : > { %v1954_v40 = vrot.slane %v1950_v44, 6  ;;  %1288 = vrot.lane.b32.xlu1 %v1279_v38, %s2994_s17  ;;  %v1348_v6 = vrot.slane %v1339_v42, %v3371_v12  ;;  %v1166_v7 = vcombine.high %v3663_v20, %v3663_v20  ;;  %v1308_v13 = vld [vmem:[#allocation6] sm:$0x3f]  ;;  %v1234_v17 = vcombine.high %v1232_v31, %v1232_v31  ;;  %v2029_v32 = vld [vmem:[#allocation4] sm:$0x3f] }
 0x56e   : > { %1250 = vrot.lane.b32.xlu0 %v1241_v43, %s2998_s11  ;;  %v1809_v46 = vpop.permute.xlu1 %1808  ;;  %v3691_v56 = vpop.permute.xlu0 %1912  ;;  %v1219_v15 = vcombine.high %v1211_v61, %v1211_v61  ;;  %v1310_v49 = vcombine.low %v1308_v13, %v1308_v13  ;;  %v1272_v19 = vcombine.high %v3674_v29, %v3674_v29  ;;  %v1098_v20 = vcombine.low %v1096_v45, %v1096_v45 }
 0x56f   : > { %1958 = vst [vmem:[#allocation5 + $0x10] sm:$0xc] %v1954_v40  ;;  %v1811_v51 = vsel %vm402_vm8, %v3678_v36, %v1809_v46  ;;  %v1180_v9 = vrot.slane %v1166_v7, %v3371_v12  ;;  %v1248_v18 = vrot.slane %v1234_v17, %v3371_v12  ;;  %v1204_v24 = vcombine.high %v1202_v39, %v1202_v39 }
 0x570   : > { %1815 = vst [vmem:[#allocation5 + $0x8] sm:$0xc] %v1811_v51  ;;  %v1317_v47 = vrot.slane %v1310_v49, %v3371_v12  ;;  %v1286_v22 = vrot.slane %v1272_v19, %v3371_v12  ;;  %v1105_v23 = vrot.slane %v1098_v20, %v3371_v12  ;;  %v1341_v26 = vcombine.high %v1339_v42, %v1339_v42 }
 0x571   : > { %1118 = vrot.lane.b32.xlu1 %v1112_v54, %s2999_s22  ;;  %v1218_v27 = vrot.slane %v1204_v24, %v3371_v12  ;;  %v1324_v63 = vrot.slane %v1308_v13, %v3371_v12  ;;  %v1356_v25 = vcombine.high %v1348_v6, %v1348_v6  ;;  %v2038_v34 = vrot.slane %v2029_v32, %v3371_v12 }
 0x572   : > { %1146 = vrot.lane.b32.xlu0 %v1143_v50, %s2997_s12  ;;  %v1915_v59 = vpop.permute.xlu1 %1914  ;;  %v3702_v62 = vpop.permute.xlu0 %2019  ;;  %v1355_v28 = vrot.slane %v1341_v26, %v3371_v12  ;;  %v1113_v31 = vcombine.high %v1105_v23, %v1105_v23  ;;  %v1325_v35 = vcombine.low %v1317_v47, %v1317_v47  ;;  %v2015_v38 = vcombine.low %v3635_v41, %v3635_v41 }
 0x573   : > { %v1917_v60 = vsel %vm4029_vm1, %v3691_v56, %v1915_v59  ;;  %v1326_v29 = vcombine.low %v1324_v63, %v1324_v63  ;;  %v2046_v43 = vcombine.high %v2038_v34, %v2038_v34  ;;  %v2031_v44 = vcombine.high %v2029_v32, %v2029_v32 }
 0x574   : > { %1921 = vst [vmem:[#allocation5 + $0x18] sm:$0x3] %v1917_v60 }
 0x575   : > { %1220 = vrot.lane.b32.xlu1 %v1211_v61, %s2996_s14  ;;  %v2045_v45 = vrot.slane %v2031_v44, %v3371_v12 }
 0x576   : > { %1184 = vrot.lane.b32.xlu0 %v1181_v55, %s2995_s15  ;;  %v2022_v0 = vpop.permute.xlu1 %2021 }
 0x577   : > { %v2024_v4 = vsel %vm4030_vm0, %v3702_v62, %v2022_v0 }
 0x578   : > { %2028 = vst [vmem:[#allocation5 + $0x18] sm:$0xc0] %v2024_v4 }
 0x579   : > { %1357 = vrot.lane.b32.xlu1 %v1348_v6, %s3001_s20 }
 0x57a   : > { %1252 = vrot.lane.b32.xlu0 %v1249_v5, %s2998_s11 }
 0x57d   : > { %1148 = vrot.lane.b32.xlu1 %v1142_v11, %s2997_s12 }
 0x57e   : > { %1290 = vrot.lane.b32.xlu0 %v1287_v10, %s2994_s17 }
 0x581   : > { %1186 = vrot.lane.b32.xlu1 %v1180_v9, %s2995_s15 }
 0x582   : > { %1222 = vrot.lane.b32.xlu0 %v1219_v15, %s2996_s14 }
 0x585   : > { %1254 = vrot.lane.b32.xlu1 %v1248_v18, %s2998_s11 }
 0x586   : > { %1329 = vrot.lane.b32.xlu0 %v1317_v47, %s3000_s19 }
 0x589   : > { %1292 = vrot.lane.b32.xlu1 %v1286_v22, %s2994_s17 }
 0x58a   : > { %1114 = vrot.lane.b32.xlu0 %v1105_v23, %s2999_s22 }
 0x58d   : > { %1224 = vrot.lane.b32.xlu1 %v1218_v27, %s2996_s14 }
 0x58e   : > { %1361 = vrot.lane.b32.xlu0 %v1355_v28, %s3001_s20 }
 0x591   : > { %1331 = vrot.lane.b32.xlu1 %v1326_v29, %s3000_s19 }
 0x592   : > { %1116 = vrot.lane.b32.xlu0 %v1113_v31, %s2999_s22 }
 0x595   : > { %1359 = vrot.lane.b32.xlu1 %v1356_v25, %s3001_s20 }
 0x596   : > { %1327 = vrot.lane.b32.xlu0 %v1325_v35, %s3000_s19 }
 0x599   : > { %1910 = vrot.lane.b32.xlu1 %v3625_v33, %s2996_s14 }
 0x59a   : > { %1804 = vrot.lane.b32.xlu0 %v3618_v30, %s2999_s22 }
 0x59d   : > { %2049 = vrot.lane.b32.xlu1 %v2046_v43, %s3001_s20 }
 0x59e   : > { %2017 = vrot.lane.b32.xlu0 %v2015_v38, %s3000_s19 }
 0x5a1   : > { %2047 = vrot.lane.b32.xlu1 %v2038_v34, %s3001_s20 }
 0x5a2   : > { %2051 = vrot.lane.b32.xlu0 %v2045_v45, %s3001_s20 }
 0x5db   : > { %v1183_v48 = vpop.permute.xlu1 %1182 }
 0x5dc   : > { %v1145_v33 = vpop.permute.xlu0 %1144 }
 0x5df   : > { %v1289_v40 = vpop.permute.xlu1 %1288 }
 0x5e0   : > { %v1251_v46 = vpop.permute.xlu0 %1250 }
 0x5e3   : > { %v1119_v30 = vpop.permute.xlu1 %1118 }
 0x5e4   : > { %v1147_v50 = vpop.permute.xlu0 %1146 }
 0x5e5   : > { %v1150_v41 = vsel %vm424_vm11, %v1145_v33, %v1147_v50 }
 0x5e6   : > { %v1154_v51 = vsel %vm3269_vm12, %v1150_v41, 0.0 }
 0x5e7   : > { %v1158_v54 = vrot.slane %v1154_v51, 4  ;;  %v1221_v39 = vpop.permute.xlu1 %1220 }
 0x5e8   : > { %v1185_v58 = vpop.permute.xlu0 %1184 }
 0x5e9   : > { %1162 = vst [vmem:[#allocation7] sm:$0x30] %v1158_v54  ;;  %v1188_v59 = vsel %vm444_vm10, %v1183_v48, %v1185_v58 }
 0x5ea   : > { %v1192_v60 = vsel %vm3211_vm6, %v1188_v59, 0.0 }
 0x5eb   : > { %v1196_v55 = vrot.slane %v1192_v60, 2  ;;  %v1358_v61 = vpop.permute.xlu1 %1357 }
 0x5ec   : > { %v1253_v42 = vpop.permute.xlu0 %1252 }
 0x5ed   : > { %1200 = vst [vmem:[#allocation7] sm:$0xc0] %v1196_v55  ;;  %v1256_v0 = vsel %vm3997_vm14, %v1251_v46, %v1253_v42 }
 0x5ee   : > { %v1260_v2 = vsel %vm3269_vm12, %v1256_v0, 0.0 }
 0x5ef   : > { %v1264_v4 = vrot.slane %v1260_v2, 6  ;;  %v1149_v5 = vpop.permute.xlu1 %1148 }
 0x5f0   : > { %v1291_v6 = vpop.permute.xlu0 %1290  ;;  %v1151_v10 = vsel %vm424_vm11, %v1147_v50, %v1149_v5 }
 0x5f1   : > { %1268 = vst [vmem:[#allocation7 + $0x10] sm:$0xc] %v1264_v4  ;;  %v1294_v11 = vsel %vm3996_vm15, %v1289_v40, %v1291_v6  ;;  %v1155_v7 = vsel %vm3275_vm13, %v1151_v10, 0.0 }
 0x5f2   : > { %v1298_v13 = vsel %vm3211_vm6, %v1294_v11, 0.0  ;;  %v1159_v15 = vrot.slane %v1155_v7, 4 }
 0x5f3   : > { %v1302_v9 = vrot.slane %v1298_v13, 4  ;;  %v1187_v49 = vpop.permute.xlu1 %1186 }
 0x5f4   : > { %v1223_v17 = vpop.permute.xlu0 %1222  ;;  %1163 = vst [vmem:[#allocation7 + $0x8] sm:$0x30] %v1159_v15  ;;  %v1189_v47 = vsel %vm444_vm10, %v1185_v58, %v1187_v49  ;;  %v3800_v49 = vld [vmem:[%s3984_s5] sm:$0x1] }
 0x5f5   : > { %1306 = vst [vmem:[#allocation7 + $0x10] sm:$0x30] %v1302_v9  ;;  %v1226_v18 = vsel %vm4031_vm2, %v1221_v39, %v1223_v17  ;;  %v1193_v19 = vsel %vm3219_vm7, %v1189_v47, 0.0  ;;  %vm4032_vm2 = vcmask 769024   ;;  %v2062_v9 = vld [vmem:[#allocation5 + $0x8] sm:$0xff] }
 0x5f6   : > { %1230 = vst [vmem:[#allocation7 + $0x10] sm:$0x3] %v1226_v18  ;;  %v1197_v20 = vrot.slane %v1193_v19, 2 }
 0x5f7   : > { %v1255_v22 = vpop.permute.xlu1 %1254 }
 0x5f8   : > { %v1330_v23 = vpop.permute.xlu0 %1329  ;;  %1201 = vst [vmem:[#allocation7 + $0x8] sm:$0xc0] %v1197_v20  ;;  %v1257_v24 = vsel %vm3997_vm14, %v1253_v42, %v1255_v22  ;;  %vm4034_vm14 = vmmov %vm4030_vm0 }
 0x5f9   : > { %v1261_v26 = vsel %vm3275_vm13, %v1257_v24, 0.0 }
 0x5fa   : > { %v1265_v27 = vrot.slane %v1261_v26, 6 }
 0x5fb   : > { %v1293_v28 = vpop.permute.xlu1 %1292 }
 0x5fc   : > { %v1115_v63 = vpop.permute.xlu0 %1114  ;;  %1269 = vst [vmem:[#allocation7 + $0x18] sm:$0xc] %v1265_v27  ;;  %v1295_v29 = vsel %vm3996_vm15, %v1291_v6, %v1293_v28  ;;  %vm4033_vm15 = vmmov %vm4032_vm2 }
 0x5fd   : > { %v1299_v31 = vsel %vm3219_vm7, %v1295_v29, 0.0 }
 0x5fe   : > { %v1303_v25 = vrot.slane %v1299_v31, 4 }
 0x5ff   : > { %v1225_v35 = vpop.permute.xlu1 %1224 }
 0x600   : > { %v1362_v32 = vpop.permute.xlu0 %1361  ;;  %1307 = vst [vmem:[#allocation7 + $0x18] sm:$0x30] %v1303_v25  ;;  %v1227_v34 = vsel %vm4029_vm1, %v1223_v17, %v1225_v35 }
 0x601   : > { %1231 = vst [vmem:[#allocation7 + $0x18] sm:$0x3] %v1227_v34 }
 0x603   : > { %v1332_v38 = vpop.permute.xlu1 %1331 }
 0x604   : > { %v1117_v43 = vpop.permute.xlu0 %1116  ;;  %v1334_v44 = vsel %vm4030_vm0, %v1330_v23, %v1332_v38 }
 0x605   : > { %v1120_v45 = vsel %vm402_vm8, %v1115_v63, %v1117_v43  ;;  %v1121_v48 = vsel %vm402_vm8, %v1117_v43, %v1119_v30  ;;  %1338 = vst [vmem:[#allocation7 + $0x18] sm:$0xc0] %v1334_v44 }
 0x606   : > { %1124 = vst [vmem:[#allocation7] sm:$0xc] %v1120_v45  ;;  %1125 = vst [vmem:[#allocation7 + $0x8] sm:$0xc] %v1121_v48 }
 0x607   : > { %v1360_v33 = vpop.permute.xlu1 %1359 }
 0x608   : > { %v1328_v40 = vpop.permute.xlu0 %1327  ;;  %v1363_v46 = vsel %vm4032_vm2, %v1358_v61, %v1360_v33  ;;  %v1364_v50 = vsel %vm4033_vm15, %v1360_v33, %v1362_v32  ;;  %vm4036_vm15 = vmmov %vm4032_vm2 }
 0x609   : > { %v1333_v41 = vsel %vm4034_vm14, %v1328_v40, %v1330_v23  ;;  %v1367_v51 = vsel %vm3269_vm12, %v1363_v46, 0.0  ;;  %v1368_v54 = vsel %vm3275_vm13, %v1364_v50, 0.0  ;;  %vm4035_vm14 = vmmov %vm4030_vm0 }
 0x60a   : > { %1337 = vst [vmem:[#allocation7 + $0x10] sm:$0xc0] %v1333_v41  ;;  %1369 = vst [vmem:[#allocation7 + $0x20] sm:$0x3] %v1367_v51 }
 0x60b   : > { %1370 = vst [vmem:[#allocation7 + $0x28] sm:$0x3] %v1368_v54  ;;  %v1911_v30 = vpop.permute.xlu1 %1910  ;;  %vm4037_vm0 = vmmov %vm4032_vm2 }
 0x60c   : > { %v1805_v39 = vpop.permute.xlu0 %1804  ;;  %v1916_v58 = vsel %vm4029_vm1, %v1911_v30, %v3691_v56  ;;  %v1374_v55 = vld [vmem:[#allocation7 + $0x18] sm:$0xff] }
 0x60d   : > { %v1810_v59 = vsel %vm402_vm8, %v1805_v39, %v3678_v36  ;;  %v1372_v60 = vld [vmem:[#allocation7 + $0x8] sm:$0xff]  ;;  %1920 = vst [vmem:[#allocation5 + $0x10] sm:$0x3] %v1916_v58  ;;  %v1371_v4 = vld [vmem:[#allocation7] sm:$0xff] }
 0x60e   : > { %1814 = vst [vmem:[#allocation5] sm:$0xc] %v1810_v59  ;;  %v2708_v61 = vpack.c.bf16 %v1374_v55, %v1372_v60  ;;  %v2064_v36 = vld [vmem:[#allocation5 + $0x18] sm:$0xff] }
 0x60f   : > { %v2050_v42 = vpop.permute.xlu1 %2049  ;;  %v2720_v47 = vpack.c.bf16 %v2064_v36, %v2062_v9 }
 0x610   : > { %2709 = vmatprep.subr.bf16.mxu1 %v2708_v61  ;;  %v2018_v0 = vpop.permute.xlu0 %2017 }
 0x611   : > { %v2023_v2 = vsel %vm4035_vm14, %v2018_v0, %v3702_v62  ;;  %v1373_v5 = vld [vmem:[#allocation7 + $0x10] sm:$0xff]  ;;  %v1375_v17 = vld [vmem:[#allocation7 + $0x20] sm:$0x3] }
 0x612   : > { %2027 = vst [vmem:[#allocation5 + $0x10] sm:$0xc0] %v2023_v2  ;;  %v2710_v6 = vpack.c.bf16 %v1373_v5, %v1371_v4  ;;  %v1376_v11 = vld [vmem:[#allocation7 + $0x28] sm:$0x3] }
 0x613   : > { %v2048_v10 = vpop.permute.xlu1 %2047 }
 0x614   : > { %2711 = vmatpush1.bf16.msra.mxu1 %v2710_v6  ;;  %v2052_v56 = vpop.permute.xlu0 %2051  ;;  %v2053_v7 = vsel %vm4036_vm15, %v2048_v10, %v2050_v42  ;;  %vm4047_vm15 = vmmov %vm4037_vm0 }
 0x615   : > { %v2054_v13 = vsel %vm4037_vm0, %v2050_v42, %v2052_v56  ;;  %2676 = vmatprep.subr.msk.mxu1 %vm986_vm5, %v1376_v11  ;;  %v2057_v15 = vsel %vm3269_vm12, %v2053_v7, 0.0  ;;  %v2061_v18 = vld [vmem:[#allocation5] sm:$0xff] }
 0x616   : > { %v2058_v62 = vsel %vm3275_vm13, %v2054_v13, 0.0  ;;  %2059 = vst [vmem:[#allocation5 + $0x20] sm:$0x3] %v2057_v15 }
 0x617   : > { %2060 = vst [vmem:[#allocation5 + $0x28] sm:$0x3] %v2058_v62 }
 0x618   : > { %2677 = vmatpush1.msk.msra.mxu1 %vm986_vm5, %v1375_v17 }
 0x619   : > { %2721 = vmatprep.subr.bf16.mxu1 %v2720_v47  ;;  %2678 = vmatmul.mubr.msk.f32.vlgmr.msra.gmra.mrb[2].mxu1 %vm982_vm3, %v3800_v49  ;;  %v2063_v19 = vld [vmem:[#allocation5 + $0x10] sm:$0xff] }
 0x61a   : > { %v2722_v20 = vpack.c.bf16 %v2063_v19, %v2061_v18  ;;  %2137 = vmatprep.mubr.f32.mxu1 %v2992_v1 }
 0x61c   : > { %2723 = vmatpush1.bf16.msra.mxu1 %v2722_v20 }
 0x61d   : > { %v2065_v23 = vld [vmem:[#allocation5 + $0x20] sm:$0x3] }
 0x61e   : > { %v2066_v22 = vld [vmem:[#allocation5 + $0x28] sm:$0x3] }
 0x61f   : > { %2683 = vmatprep.subr.msk.mxu1 %vm986_vm5, %v2066_v22 }
 0x620   : > { %2684 = vmatpush1.msk.msra.mxu1 %vm986_vm5, %v2065_v23 }
 0x621   : > { %2685 = vmatmul.mubr.msk.f32.vlgmr.msra.gmra.mrb[4].mxu1 %vm982_vm3, %v3570_v37 }
 0x622   : > { %2527 = vmatprep.mubr.f32.mxu1 %v2992_v1 }
 0x6ec   : > { %v3811_v24 = vpop.f32.mrb[2].mxu1 }
 0x6ed   : > { %v3813_v26 = vpop.f32.mrb[3].mxu1 }
 0x6f4   : > { %v2139_v27 = vpop.f32.mrb[4].mxu1 }
 0x6f5   : > { %v2140_v28 = vadd.f32 %v2139_v27, %v3587_v57  ;;  %v2141_v63 = vpop.f32.mrb[5].mxu1  ;;  %v363_v27 = vld [vmem:[#allocation8] sm:$0x1] }
 0x6f6   : > { %v2142_v29 = vadd.f32 %v2141_v63, %v3587_v57 }
 0x6f8   : > { %v2146_v31 = vcombine.low %v2140_v28, %v2142_v29 }
 0x6fa   : > { %v2153_v25 = vrot.slane %v2146_v31, %v3371_v12 }
 0x6fc   : > { %2154 = vrot.lane.b32.xlu0 %v2153_v25, %s2993_s26  ;;  %s2667_s26 = sshll.u32 %s3176_s13, 2 }
 0x76e   : > { %v2155_v35 = vpop.permute.xlu0 %2154 }
 0x76f   : > { %v2156_v32 = vrot.slane %v2155_v35, 6 }
 0x771   : > { %v2157_v37 = vsel %vm369_vm4, %v2156_v32, %v2155_v35  ;;  %vm4038_vm4 = vcmask 900096  }
 0x772   : > { %2159 = vst.msk [vmem:[#allocation6] sm:$0x3f] %vm3391_vm9, %v2157_v37  ;;  %vm4039_vm9 = vcmask 785408   ;;  %vm4041_vm2 = vmmov %vm4038_vm4 }
 0x779   : > { %v2244_v1 = vld [vmem:[#allocation6] sm:$0x3f] }
 0x77a   : > { %v2206_v34 = vld [vmem:[#allocation6] sm:$0x3f]  ;;  %v2253_v38 = vrot.slane %v2244_v1, %v3371_v12  ;;  %v2246_v55 = vcombine.high %v2244_v1, %v2244_v1 }
 0x77b   : > { %v2215_v43 = vrot.slane %v2206_v34, %v3371_v12  ;;  %v2350_v44 = vld [vmem:[#allocation6] sm:$0x3f]  ;;  %v2208_v58 = vcombine.high %v2206_v34, %v2206_v34 }
 0x77c   : > { %v2312_v57 = vld [vmem:[#allocation6] sm:$0x3f]  ;;  %2262 = vrot.lane.b32.xlu0 %v2253_v38, %s2995_s15  ;;  %v2359_v48 = vrot.slane %v2350_v44, %v3371_v12  ;;  %v2261_v30 = vcombine.high %v2253_v38, %v2253_v38  ;;  %v2260_v42 = vrot.slane %v2246_v55, %v3371_v12  ;;  %v2352_v10 = vcombine.high %v2350_v44, %v2350_v44 }
 0x77d   : > { %2224 = vrot.lane.b32.xlu1 %v2215_v43, %s2997_s12  ;;  %v2686_v45 = vld.sshfl [vmem:[#allocation6] sm:$0x33 pattern:$0x76325410]  ;;  %v2321_v33 = vrot.slane %v2312_v57, %v3371_v12  ;;  %v2223_v46 = vcombine.high %v2215_v43, %v2215_v43  ;;  %v2222_v60 = vrot.slane %v2208_v58, %v3371_v12  ;;  %v2314_v0 = vcombine.high %v2312_v57, %v2312_v57 }
 0x77e   : > { %v2176_v40 = vld [vmem:[#allocation6] sm:$0x3f]  ;;  %v2172_v21 = vsel %vm3211_vm6, %v2686_v45, 0.0  ;;  %v2169_v41 = vcombine.high %v2686_v45, %v2686_v45  ;;  %v2367_v61 = vcombine.high %v2359_v48, %v2359_v48  ;;  %v2366_v11 = vrot.slane %v2352_v10, %v3371_v12 }
 0x77f   : > { %2174 = vst [vmem:[#allocation7] sm:$0x3] %v2172_v21  ;;  %v2192_v50 = vrot.slane %v2176_v40, %v3371_v12  ;;  %v2282_v51 = vld [vmem:[#allocation6] sm:$0x3f]  ;;  %v2329_v59 = vcombine.high %v2321_v33, %v2321_v33  ;;  %v2328_v5 = vrot.slane %v2314_v0, %v3371_v12  ;;  %v2178_v7 = vcombine.low %v2176_v40, %v2176_v40 }
 0x780   : > { %2368 = vrot.lane.b32.xlu0 %v2359_v48, %s2994_s17  ;;  %v2173_v54 = vsel %vm3219_vm7, %v2169_v41, 0.0  ;;  %v2291_v39 = vrot.slane %v2282_v51, %v3371_v12  ;;  %v2388_v2 = vld [vmem:[#allocation6] sm:$0x3f]  ;;  %v2284_v36 = vcombine.high %v2282_v51, %v2282_v51 }
 0x781   : > { %2330 = vrot.lane.b32.xlu1 %v2321_v33, %s2998_s11  ;;  %2175 = vst [vmem:[#allocation7 + $0x8] sm:$0x3] %v2173_v54  ;;  %v2390_v6 = vcombine.low %v2388_v2, %v2388_v2  ;;  %v2185_v15 = vrot.slane %v2178_v7, %v3371_v12  ;;  %v2404_v62 = vrot.slane %v2388_v2, %v3371_v12  ;;  %v2419_v9 = vld [vmem:[#allocation6] sm:$0x3f] }
 0x782   : > { %v2299_v4 = vcombine.high %v2291_v39, %v2291_v39  ;;  %v2298_v13 = vrot.slane %v2284_v36, %v3371_v12  ;;  %v2428_v18 = vrot.slane %v2419_v9, %v3371_v12  ;;  %v2421_v22 = vcombine.high %v2419_v9, %v2419_v9 }
 0x783   : > { %v2397_v56 = vrot.slane %v2390_v6, %v3371_v12  ;;  %v2406_v17 = vcombine.low %v2404_v62, %v2404_v62  ;;  %v2193_v47 = vcombine.high %v2185_v15, %v2185_v15 }
 0x784   : > { %2198 = vrot.lane.b32.xlu0 %v2192_v50, %s2999_s22  ;;  %v2436_v19 = vcombine.high %v2428_v18, %v2428_v18  ;;  %v2435_v23 = vrot.slane %v2421_v22, %v3371_v12 }
 0x785   : > { %2226 = vrot.lane.b32.xlu1 %v2223_v46, %s2997_s12  ;;  %v2405_v20 = vcombine.low %v2397_v56, %v2397_v56 }
 0x788   : > { %2300 = vrot.lane.b32.xlu0 %v2291_v39, %s2996_s14 }
 0x789   : > { %2264 = vrot.lane.b32.xlu1 %v2261_v30, %s2995_s15 }
 0x78c   : > { %2228 = vrot.lane.b32.xlu0 %v2222_v60, %s2997_s12 }
 0x78d   : > { %2332 = vrot.lane.b32.xlu1 %v2329_v59, %s2998_s11 }
 0x790   : > { %2266 = vrot.lane.b32.xlu0 %v2260_v42, %s2995_s15  ;;  %s2691_s15 = sshll.u32 %s2973_s29, 2  ;;  %s2554_s29 = scalar_lea.sflag [#allocation11], %s3176_s13 }
 0x791   : > { %2370 = vrot.lane.b32.xlu1 %v2367_v61, %s2994_s17 }
 0x794   : > { %2334 = vrot.lane.b32.xlu0 %v2328_v5, %s2998_s11 }
 0x795   : > { %2302 = vrot.lane.b32.xlu1 %v2299_v4, %s2996_s14 }
 0x798   : > { %2372 = vrot.lane.b32.xlu0 %v2366_v11, %s2994_s17  ;;  %s314_s17 = scalar_lea.vmem [#allocation12], %s2667_s26 }
 0x799   : > { %2409 = vrot.lane.b32.xlu1 %v2397_v56, %s3000_s19 }
 0x79c   : > { %2304 = vrot.lane.b32.xlu0 %v2298_v13, %s2996_s14  ;;  %s2692_s14 = sshll.u32 %s2977_s30, 3 }
 0x79d   : > { %2194 = vrot.lane.b32.xlu1 %v2185_v15, %s2999_s22  ;;  %s2566_s12 = sadd.s32 %s2692_s14, %s2691_s15 }
 0x79e   : > { %s2693_s11 = sshll.u32 %s2566_s12, 4 }
 0x79f   : > { %s3923_s25 = scalar_lea.hbm %s3986_s7, %s2693_s11 }
 0x7a0   : > { %2411 = vrot.lane.b32.xlu0 %v2406_v17, %s3000_s19 }
 0x7a1   : > { %2196 = vrot.lane.b32.xlu1 %v2193_v47, %s2999_s22  ;;  %s2570_s22 = sshll.u32 %s314_s17, 4  ;;  %s3925_s22 = int_to_ptr.vmem [resolvable:$true] %s2570_s22 }
 0x7a2   : > { %s2891_s30 = scalar_lea.vmem %s3925_s22, 64  ;;  %p2898_p6 = scmp.lt.s32.totalorder %s3925_s22, %s2896_s16 }
 0x7a3   : > { %p2892_p8 = scmp.ne.s32.totalorder %s3925_s22, %s2891_s30  ;;  %p2899_p13 = scmp.lt.s32.totalorder %s2897_s24, %s2891_s30 }
 0x7a4   : > { %2439 = vrot.lane.b32.xlu0 %v2436_v19, %s3001_s20 }
 0x7a5   : > { %2407 = vrot.lane.b32.xlu1 %v2405_v20, %s3000_s19  ;;  %p2893_p12 = pnand %p2892_p8, %p4050_p9  ;;  %p2900_p4 = por %p2899_p13, %p2898_p6 }
 0x7a7   : > { %p2894_p0 = pneg %p2893_p12 }
 0x7a8   : > { %2437 = vrot.lane.b32.xlu0 %v2428_v18, %s3001_s20 }
 0x7a9   : > { %2441 = vrot.lane.b32.xlu1 %v2435_v23, %s3001_s20  ;;  %p2901_p5 = pnand %p2900_p4, %p2894_p0 }
 0x7ad   : > { %1379 = vperm.xlu1 %2819, %v363_v27  }
 0x7ee   : > { %v2263_v28 = vpop.permute.xlu0 %2262 }
 0x7ef   : > { %v2225_v63 = vpop.permute.xlu1 %2224 }
 0x7f2   : > { %v2369_v29 = vpop.permute.xlu0 %2368 }
 0x7f3   : > { %v2331_v31 = vpop.permute.xlu1 %2330 }
 0x7f6   : > { %v2199_v35 = vpop.permute.xlu0 %2198 }
 0x7f7   : > { %v2227_v25 = vpop.permute.xlu1 %2226 }
 0x7f8   : > { %v2230_v32 = vsel %vm424_vm11, %v2225_v63, %v2227_v25 }
 0x7f9   : > { %v2234_v37 = vsel %vm3269_vm12, %v2230_v32, 0.0 }
 0x7fa   : > { %v2238_v1 = vrot.slane %v2234_v37, 4  ;;  %v2301_v12 = vpop.permute.xlu0 %2300 }
 0x7fb   : > { %v2265_v34 = vpop.permute.xlu1 %2264 }
 0x7fc   : > { %2242 = vst [vmem:[#allocation7] sm:$0x30] %v2238_v1  ;;  %v2268_v38 = vsel %vm444_vm10, %v2263_v28, %v2265_v34 }
 0x7fd   : > { %v2272_v43 = vsel %vm3211_vm6, %v2268_v38, 0.0 }
 0x7fe   : > { %v2276_v44 = vrot.slane %v2272_v43, 2  ;;  %v2229_v45 = vpop.permute.xlu0 %2228 }
 0x7ff   : > { %v2333_v57 = vpop.permute.xlu1 %2332  ;;  %v2231_v33 = vsel %vm424_vm11, %v2227_v25, %v2229_v45  ;;  %vm4040_vm11 = vmmov %vm4029_vm1 }
 0x800   : > { %2280 = vst [vmem:[#allocation7] sm:$0xc0] %v2276_v44  ;;  %v2336_v48 = vsel %vm4038_vm4, %v2331_v31, %v2333_v57  ;;  %v2235_v21 = vsel %vm3275_vm13, %v2231_v33, 0.0 }
 0x801   : > { %v2340_v40 = vsel %vm3269_vm12, %v2336_v48, 0.0  ;;  %v2239_v50 = vrot.slane %v2235_v21, 4 }
 0x802   : > { %v2344_v46 = vrot.slane %v2340_v40, 6  ;;  %v2267_v51 = vpop.permute.xlu0 %2266 }
 0x803   : > { %v2371_v41 = vpop.permute.xlu1 %2370  ;;  %2243 = vst [vmem:[#allocation7 + $0x8] sm:$0x30] %v2239_v50  ;;  %v2269_v30 = vsel %vm444_vm10, %v2265_v34, %v2267_v51  ;;  %vm4043_vm10 = vmmov %vm4029_vm1  ;;  %v1470_v34 = vunpack.c.l.s4 %v3004_v52 }
 0x804   : > { %2348 = vst [vmem:[#allocation7 + $0x10] sm:$0xc] %v2344_v46  ;;  %v2374_v54 = vsel %vm4039_vm9, %v2369_v29, %v2371_v41  ;;  %v2273_v58 = vsel %vm3219_vm7, %v2269_v30, 0.0  ;;  %vm4044_vm1 = vmmov %vm4035_vm14 }
 0x805   : > { %v2378_v39 = vsel %vm3211_vm6, %v2374_v54, 0.0  ;;  %v2277_v60 = vrot.slane %v2273_v58, 2  ;;  %vm4042_vm6 = vmmov %vm4039_vm9 }
 0x806   : > { %v2382_v59 = vrot.slane %v2378_v39, 4  ;;  %v2335_v61 = vpop.permute.xlu0 %2334  ;;  %vm4046_vm14 = vmmov %vm4037_vm0 }
 0x807   : > { %v2303_v55 = vpop.permute.xlu1 %2302  ;;  %2281 = vst [vmem:[#allocation7 + $0x8] sm:$0xc0] %v2277_v60  ;;  %v2337_v0 = vsel %vm4041_vm2, %v2333_v57, %v2335_v61 }
 0x808   : > { %2386 = vst [vmem:[#allocation7 + $0x10] sm:$0x30] %v2382_v59  ;;  %v2306_v42 = vsel %vm4040_vm11, %v2301_v12, %v2303_v55  ;;  %v2341_v2 = vsel %vm3275_vm13, %v2337_v0, 0.0  ;;  %v1471_v12 = vunpack.c.0.s8 %v1470_v34 }
 0x809   : > { %2310 = vst [vmem:[#allocation7 + $0x10] sm:$0x3] %v2306_v42  ;;  %v2345_v4 = vrot.slane %v2341_v2, 6 }
 0x80a   : > { %v2373_v5 = vpop.permute.xlu0 %2372  ;;  %v1474_v44 = vsub.s32 %v1471_v12, %v3367_v8 }
 0x80b   : > { %v2410_v14 = vpop.permute.xlu1 %2409  ;;  %2349 = vst [vmem:[#allocation7 + $0x18] sm:$0xc] %v2345_v4  ;;  %v2375_v6 = vsel %vm4042_vm6, %v2371_v41, %v2373_v5 }
 0x80c   : > { %v2379_v10 = vsel %vm3219_vm7, %v2375_v6, 0.0  ;;  %vm4045_vm7 = vmmov %vm4044_vm1 }
 0x80d   : > { %v2383_v56 = vrot.slane %v2379_v10, 4 }
 0x80e   : > { %v2305_v11 = vpop.permute.xlu0 %2304 }
 0x80f   : > { %v2195_v36 = vpop.permute.xlu1 %2194  ;;  %2387 = vst [vmem:[#allocation7 + $0x18] sm:$0x30] %v2383_v56  ;;  %v2307_v7 = vsel %vm4043_vm10, %v2303_v55, %v2305_v11 }
 0x810   : > { %2311 = vst [vmem:[#allocation7 + $0x18] sm:$0x3] %v2307_v7 }
 0x812   : > { %v2412_v13 = vpop.permute.xlu0 %2411 }
 0x813   : > { %v2197_v15 = vpop.permute.xlu1 %2196  ;;  %v2414_v62 = vsel %vm4044_vm1, %v2410_v14, %v2412_v13 }
 0x814   : > { %v2200_v9 = vsel %vm402_vm8, %v2195_v36, %v2197_v15  ;;  %v2201_v17 = vsel %vm402_vm8, %v2197_v15, %v2199_v35  ;;  %2418 = vst [vmem:[#allocation7 + $0x18] sm:$0xc0] %v2414_v62  ;;  %vm3912_vm8 = vcmp.lt.s32.totalorder %v317_v3, 256 }
 0x815   : > { %2204 = vst [vmem:[#allocation7] sm:$0xc] %v2200_v9  ;;  %2205 = vst [vmem:[#allocation7 + $0x8] sm:$0xc] %v2201_v17 }
 0x816   : > { %v2440_v16 = vpop.permute.xlu0 %2439 }
 0x817   : > { %v2408_v47 = vpop.permute.xlu1 %2407 }
 0x818   : > { %v2413_v18 = vsel %vm4045_vm7, %v2408_v47, %v2410_v14 }
 0x819   : > { %2417 = vst [vmem:[#allocation7 + $0x10] sm:$0xc0] %v2413_v18 }
 0x81a   : > { %v2438_v19 = vpop.permute.xlu0 %2437 }
 0x81b   : > { %v2442_v20 = vpop.permute.xlu1 %2441  ;;  %v2443_v22 = vsel %vm4046_vm14, %v2438_v19, %v2440_v16  ;;  %v2454_v28 = vld [vmem:[#allocation7 + $0x18] sm:$0xff] }
 0x81c   : > { %v2444_v23 = vsel %vm4047_vm15, %v2440_v16, %v2442_v20  ;;  %v2452_v27 = vld [vmem:[#allocation7 + $0x8] sm:$0xff]  ;;  %v2447_v63 = vsel %vm3269_vm12, %v2443_v22, 0.0  ;;  %v2451_v25 = vld [vmem:[#allocation7] sm:$0xff] }
 0x81d   : > { %v2448_v29 = vsel %vm3275_vm13, %v2444_v23, 0.0  ;;  %v2724_v31 = vpack.c.bf16 %v2454_v28, %v2452_v27  ;;  %2449 = vst [vmem:[#allocation7 + $0x20] sm:$0x3] %v2447_v63 }
 0x81e   : > { %2450 = vst [vmem:[#allocation7 + $0x28] sm:$0x3] %v2448_v29 }
 0x81f   : > { %2725 = vmatprep.subr.bf16.mxu1 %v2724_v31 }
 0x820   : > { %v2453_v35 = vld [vmem:[#allocation7 + $0x10] sm:$0xff] }
 0x821   : > { %v2726_v32 = vpack.c.bf16 %v2453_v35, %v2451_v25 }
 0x823   : > { %2727 = vmatpush1.bf16.msra.mxu1 %v2726_v32 }
 0x824   : > { %v2455_v1 = vld [vmem:[#allocation7 + $0x20] sm:$0x3] }
 0x825   : > { %v2456_v37 = vld [vmem:[#allocation7 + $0x28] sm:$0x3] }
 0x826   : > { %2687 = vmatprep.subr.msk.mxu1 %vm986_vm5, %v2456_v37 }
 0x827   : > { %2688 = vmatpush1.msk.msra.mxu1 %vm986_vm5, %v2455_v1 }
 0x828   : > { %2689 = vmatmul.mubr.msk.f32.vlgmr.msra.gmra.mrb[6].mxu1 %vm982_vm3, %v3800_v49 }
 0x82c   : > { %v1380_v38 = vpop.permute.xlu1 %1379 }
 0x82d   : > { %v1385_v43 = vrot.slane %v1380_v38, %v1384_v53 }
 0x82f   : > { %v1462_v57 = vadd.f32 %v3811_v24, %v1385_v43  ;;  %v1464_v45 = vadd.f32 %v3813_v26, %v1385_v43 }
 0x831   : > { %v1468_v48 = vcombine.low %v1462_v57, %v1464_v45 }
 0x833   : > { %v1475_v33 = vrot.slane %v1468_v48, %v1474_v44 }
 0x835   : > { %v1482_v49 = vrot.slane %v1475_v33, %v1474_v44 }
 0x837   : > { %1488 = vst.msk [vmem:[%s314_s17] sm:$0x3] %vm3912_vm8, %v1482_v49 }
 0x8fb   : > { %v2529_v8 = vpop.f32.mrb[6].mxu1 }
 0x8fc   : > { %v2530_v24 = vadd.f32 %v2529_v8, %v1385_v43  ;;  %v2531_v26 = vpop.f32.mrb[7].mxu1 }
 0x8fd   : > { %v2532_v21 = vadd.f32 %v2531_v26, %v1385_v43 }
 0x8ff   : > { %v2536_v46 = vcombine.low %v2530_v24, %v2532_v21 }
 0x901   : > { %v2543_v3 = vrot.slane %v2536_v46, %v1474_v44 }
 0x903   : > { %v2550_v50 = vrot.slane %v2543_v3, %v1474_v44 }
 0x905   : > { %2552 = vst.msk [vmem:[%s314_s17 + $0x2] sm:$0x3] %vm3912_vm8, %v2550_v50 }
 0x906   : > { %2904 = shalt.err (!%p2901_p5)
}
 0x907   : > { %s2905_s13 = scalar_lea.hbm %s3923_s25, 64  ;;  %s2909_s15 = scalar_lea.hbm %s3986_s7, 256 }
 0x908   : > { %p2906_p7 = scmp.ne.s32.totalorder %s3923_s25, %s2905_s13  ;;  %p2910_p1 = scmp.lt.u32.totalorder %s3923_s25, %s3986_s7 }
 0x909   : > { %p2911_p2 = scmp.lt.u32.totalorder %s2909_s15, %s2905_s13  ;;  %p2913_p8 = scmp.lt.u32.totalorder %s2905_s13, %s3923_s25 }
 0x90a   : > { %p2907_p10 = pnand %p2906_p7, %p4050_p9 }
 0x90b   : > { %p2912_p3 = por %p2911_p2, %p2910_p1 }
 0x90c   : > { %p2908_p11 = pneg %p2907_p10 }
 0x90d   : > { %p2914_p12 = por %p2913_p8, %p2912_p3 }
 0x90f   : > { %p2915_p0 = pnand %p2914_p12, %p2908_p11 }
 0x911   : > { %2918 = shalt.err (!%p2915_p0)
}
 0x912   : > { %2730 = dma.vmem_to_hbm [thread:$0]  (%p4050_p9), %s3925_s22, 64, %s3923_s25, %s2554_s29  }
 0x913 PF: > { %s4051_s11 = sld [smem:[#allocation15_spill]]  ;;  %p2741_p6 = scmp.ge.s32.totalorder %s2989_s6, 2 }
 0x914   : > { %p4052_p13 = scmp.ne.s32.totalorder %s4004_s21, 0 }
 0x916   : > { %p2737_p4 = pnand %p2741_p6, %p4052_p13 }
 0x919   : > { %s2582_s19 = sand.u32 1, %s4051_s11  }
 0x91a   : > { %s2583_s20 = scalar_lea.sflag [#allocation11], %s2582_s19 }
 0x91b   : > { %2956 = dma.done.wait (!%p2737_p4), %s2583_s20, 64  }
 0x91c   : > { %2958 = vsyncadd (!%p2737_p4), %s2583_s20, 4294967232  ;;  %s25_s6 = sadd.s32 1, %s2989_s6   ;;  %s4053_s18 = sld [smem:[#allocation16_spill]] }
 0x91d   : > { %p22_p5 = scmp.ge.s32.totalorder %s25_s6, 6   ;;  %s4054_s22 = sld [smem:[#allocation17_spill]] }
 0x91e   : > { %s4055_s26 = smov %s2965_s27  ;;  %s4056_s27 = smov %s2969_s28 }
 0x91f   : > { %s4057_s28 = smov %s3127_s23  ;;  %s4058_s29 = smov %s2981_s8 }
 0x920   : > { %s4059_s30 = smov %s2985_s9  ;;  %24 = sbr.rel (!%p22_p5) target bundleno = 10 (0xa), region = 93 }
 0x922   : > { %s4060_s8 = smov %s4053_s18 }
 0x923   : > { %s4061_s9 = smov %s4054_s22 }
 0x927   :  { %2588 = vsyncpa [#allocation10], 1 }
 0x928   :  { %2590 = vsyncpa [#allocation10 + $0x1], 1 }
 0x929   :  { %2591 = vsyncpa [#allocation11], 1 }
 0x92a   :  { %2593 = vsyncpa [#allocation11 + $0x1], 1 }

</bundles_post_ra>
